<compile_context>
chip_gen: v5e
topology: v5e:2x2
jax: 0.10.0
libtpu: 0.0.40
codegen_flags: <defaults>
</compile_context>

<pallas_src>
import jax
import jax.numpy as jnp
import numpy as np
from jax.experimental import pallas as pl
from jax.experimental.pallas import tpu as pltpu

_BN_EPS = 1e-5


def _conv5x5_bn_relu_kernel(x_ref, w_ref, b_ref, o_ref, xp_ref):
    # x_ref:  (1, H, W, C)      f32 activation (C may be lane-padded; trailing
    #                           channels have zero weights)
    # w_ref:  (5, 5*C, Cout_p)  bf16 weights, dy-major, (dx, cin) packed on K,
    #                           BN scale pre-folded per output channel
    # b_ref:  (1, Cout_p)       f32 folded BN bias (zero in padded channels)
    # o_ref:  (1, H*W, Cout_p)  f32 output, spatial flattened, lane-dense
    # xp_ref: (H+4, W, 5*C)     f32 scratch: zero-padded, dx-packed input slab
    _, H, W, C = x_ref.shape
    K5 = 5 * C

    # ---- Build the padded, dx-packed slab once per sample: 5 shifted copies
    # (instead of 25 per-tap stride-changing slices), so the dy loop below can
    # feed the MXU with contiguous row slices and a free (H,W)->(H*W) reshape.
    xp_ref[...] = jnp.zeros(xp_ref.shape, xp_ref.dtype)
    for dx in range(5):
        w_lo = max(0, 2 - dx)             # destination column range (static)
        w_hi = min(W, W + 2 - dx)
        s_lo = w_lo + dx - 2              # source column range (static)
        s_hi = w_hi + dx - 2
        xp_ref[2:2 + H, w_lo:w_hi, dx * C:(dx + 1) * C] = x_ref[0, :, s_lo:s_hi, :]

    # ---- Row-tiled conv: 5 matmuls with K = 5*C, accumulated in vregs.
    TH = H                                # output rows per tile (static)
    while TH % 2 == 0 and TH * W > 128:
        TH //= 2
    bias = b_ref[...]                     # (1, Cout_p), hoisted out of the loop

    for t in range(H // TH):
        r0 = t * TH
        acc = None
        for dy in range(5):
            lhs = xp_ref[r0 + dy:r0 + dy + TH, :, :].reshape(TH * W, K5)
            part = jnp.dot(lhs.astype(jnp.bfloat16), w_ref[dy],
                           preferred_element_type=jnp.float32)
            acc = part if acc is None else acc + part
        # Fused (folded) BatchNorm bias + ReLU epilogue; lane-dense store.
        y = jnp.maximum(acc + bias, 0.0)
        o_ref[0, r0 * W:(r0 + TH) * W, :] = y.astype(o_ref.dtype)


def _conv_bn_relu_stage(x_nhwc, w_oihw, bn):
    """One fused Conv2d(5x5, s=1, p=2, no bias) + BatchNorm(eval) + ReLU stage.

    `x_nhwc` may carry more channels than the conv consumes (its trailing,
    lane-padding channels get zero weight rows), so the lane-padded output of a
    previous stage can be fed in directly with no HBM repack between stages.
    Returns (N, H, W, Cout_p) float32 with Cout padded to a multiple of 128.
    """
    N, H, W, c_data = x_nhwc.shape
    c_out, c_in, kh, kw = w_oihw.shape
    assert (kh, kw) == (5, 5) and c_data >= c_in
    c_out_p = ((c_out + 127) // 128) * 128          # lane-dense output channels
    k5 = 5 * c_data

    gamma, beta, mean, var = [jnp.asarray(p, jnp.float32) for p in bn]
    scale = gamma / jnp.sqrt(var + _BN_EPS)         # folded BN scale
    bias = beta - mean * scale                      # folded BN bias

    # Fold BN scale into the weights (kernel epilogue = bias + ReLU only), pad
    # to the data / lane channel counts, pack (dx, cin) onto the K axis:
    #   w_packed[dy, dx*c_data + ci, o] = w[o, ci, dy, dx] * scale[o]
    wt = jnp.transpose(w_oihw.astype(jnp.float32) * scale[:, None, None, None],
                       (2, 3, 1, 0))                # (5dy, 5dx, c_in, c_out)
    wt = jnp.pad(wt, ((0, 0), (0, 0), (0, c_data - c_in), (0, c_out_p - c_out)))
    w_packed = wt.reshape(5, k5, c_out_p).astype(jnp.bfloat16)
    b_packed = jnp.pad(bias, (0, c_out_p - c_out)).reshape(1, c_out_p)

    x_f32 = x_nhwc.astype(jnp.float32)

    # Explicit VMEM budget for the double-buffered block set + scratch.
    vmem_need = (2 * (H * W * c_data * 4            # input block (x2 buffers)
                      + 5 * k5 * c_out_p * 2        # weights
                      + c_out_p * 4                 # bias
                      + H * W * c_out_p * 4)        # output block
                 + (H + 4) * W * k5 * 4             # dx-packed scratch
                 + (8 << 20))                       # headroom
    vmem_limit = int(min(64 * 1024 * 1024, max(32 * 1024 * 1024, vmem_need)))

    out = pl.pallas_call(
        _conv5x5_bn_relu_kernel,
        out_shape=jax.ShapeDtypeStruct((N, H * W, c_out_p), jnp.float32),
        grid_spec=pltpu.PrefetchScalarGridSpec(
            num_scalar_prefetch=0,
            grid=(N,),
            in_specs=[
                pl.BlockSpec((1, H, W, c_data), lambda n: (n, 0, 0, 0)),
                pl.BlockSpec((5, k5, c_out_p), lambda n: (0, 0, 0)),
                pl.BlockSpec((1, c_out_p), lambda n: (0, 0)),
            ],
            out_specs=pl.BlockSpec((1, H * W, c_out_p), lambda n: (n, 0, 0)),
            scratch_shapes=[pltpu.VMEM((H + 4, W, k5), jnp.float32)],
        ),
        compiler_params=pltpu.CompilerParams(
            dimension_semantics=("parallel",),      # batch sharded across TCs
            vmem_limit_bytes=vmem_limit,
        ),
    )(x_f32, w_packed, b_packed)
    return out.reshape(N, H, W, c_out_p)


def conv_block1_forward(x_nchw, w1, bn1, w2, bn2):
    """Pallas implementation of conv_block1.forward (NCHW in / NCHW out).

    bn1 / bn2 are (gamma, beta, running_mean, running_var); BatchNorm uses
    inference (running-stats) semantics.
    """
    x = jnp.transpose(x_nchw, (0, 2, 3, 1))          # NCHW -> NHWC
    y = _conv_bn_relu_stage(x, w1, bn1)              # (N, H, W, 128) f32
    # Stage 2 consumes the lane-padded stage-1 activation directly (the extra
    # input channels have zero weights) -> no pad / slice / repack in HBM
    # between the two pallas_calls.
    y = _conv_bn_relu_stage(y, w2, bn2)              # (N, H, W, 128) f32
    c_out = w2.shape[0]
    return jnp.transpose(y[..., :c_out], (0, 3, 1, 2))   # NHWC -> NCHW


def _reference(x_nchw, w1, bn1, w2, bn2, op_dtype=jnp.float32):
    """Pure-JAX reference (BN eval mode).  `op_dtype` sets the conv-operand
    precision: bf16 matches the kernel's MXU recipe (tight check), f32 is the
    exact module semantics (loose check)."""
    def layer(x, w, bn):
        gamma, beta, mean, var = [jnp.asarray(p, jnp.float32) for p in bn]
        scale = gamma / jnp.sqrt(var + _BN_EPS)
        shift = beta - mean * scale
        w_f = (w.astype(jnp.float32) * scale[:, None, None, None]).astype(op_dtype)
        y = jax.lax.conv_general_dilated(
            x.astype(op_dtype), w_f,
            window_strides=(1, 1), padding=((2, 2), (2, 2)),
            dimension_numbers=("NCHW", "OIHW", "NCHW"),
            preferred_element_type=jnp.float32)
        return jnp.maximum(y + shift[None, :, None, None], 0.0)

    return layer(layer(x_nchw, w1, bn1), w2, bn2)


if __name__ == "__main__":
    key = jax.random.PRNGKey(0)
    ks = jax.random.split(key, 11)

    N, Cin, Cout, H, W = 2, 4, 8, 16, 16

    x = jax.random.normal(ks[0], (N, Cin, H, W), dtype=jnp.float32)
    w1 = jax.random.normal(ks[1], (Cout, Cin, 5, 5), dtype=jnp.float32) * 0.1
    w2 = jax.random.normal(ks[2], (Cout, Cout, 5, 5), dtype=jnp.float32) * 0.1

    bn1 = (jax.random.uniform(ks[3], (Cout,), minval=0.5, maxval=1.5),
           jax.random.normal(ks[4], (Cout,)) * 0.1,
           jax.random.normal(ks[5], (Cout,)) * 0.1,
           jax.random.uniform(ks[6], (Cout,), minval=0.5, maxval=1.5))
    bn2 = (jax.random.uniform(ks[7], (Cout,), minval=0.5, maxval=1.5),
           jax.random.normal(ks[8], (Cout,)) * 0.1,
           jax.random.normal(ks[9], (Cout,)) * 0.1,
           jax.random.uniform(ks[10], (Cout,), minval=0.5, maxval=1.5))

    out = jax.block_until_ready(conv_block1_forward(x, w1, bn1, w2, bn2))
    assert out.shape == (N, Cout, H, W), out.shape

    # Tight check against a precision-matched (bf16-operand, f32-accumulate)
    # reference, loose check against the exact f32 module semantics.
    ref_bf16 = jax.block_until_ready(
        _reference(x, w1, bn1, w2, bn2, op_dtype=jnp.bfloat16))
    ref_f32 = jax.block_until_ready(
        _reference(x, w1, bn1, w2, bn2, op_dtype=jnp.float32))

    out_np = np.asarray(out)
    assert np.allclose(out_np, np.asarray(ref_bf16), rtol=2e-2, atol=2e-2), (
        float(np.max(np.abs(out_np - np.asarray(ref_bf16)))))
    assert np.allclose(out_np, np.asarray(ref_f32), rtol=1e-1, atol=1e-1), (
        float(np.max(np.abs(out_np - np.asarray(ref_f32)))))

    print("KERNEL_OK")
</pallas_src>

<mosaic_0001>
module attributes {stable_mosaic.version = 11 : i64} {
  func.func @_conv5x5_bn_relu_kernel(%arg0: i32, %arg1: memref<1x16x16x4xf32, #tpu.memory_space<vmem>>, %arg2: memref<5x20x128xbf16, #tpu.memory_space<vmem>>, %arg3: memref<1x128xf32, #tpu.memory_space<vmem>>, %arg4: memref<1x256x128xf32, #tpu.memory_space<vmem>>, %arg5: memref<20x16x20xf32, #tpu.memory_space<vmem>>) attributes {dimension_semantics = [#tpu.dimension_semantics<parallel>], iteration_bounds = array<i64: 2>, scalar_prefetch = 0 : i64, scratch_operands = 1 : i64, tpu.core_type = #tpu.core_type<tc>, window_params = [{transform_indices = @transform_0, window_bounds = array<i64: 1, 16, 16, 4>}, {pipeline_mode = #tpu.pipeline_mode<synchronous>, transform_indices = @transform_1, window_bounds = array<i64: 5, 20, 128>}, {pipeline_mode = #tpu.pipeline_mode<synchronous>, transform_indices = @transform_2, window_bounds = array<i64: 1, 128>}, {transform_indices = @transform_3, window_bounds = array<i64: 1, 256, 128>}]} {
    %cst = arith.constant 0.000000e+00 : f32
    %0 = vector.broadcast %cst : f32 to vector<20x16x20xf32>
    %c0 = arith.constant 0 : index
    %c0_0 = arith.constant 0 : index
    %c0_1 = arith.constant 0 : index
    %1 = vector.load %arg5[%c0, %c0_0, %c0_1] : memref<20x16x20xf32, #tpu.memory_space<vmem>>, vector<20x16x20xf32>
    tpu.vector_store %arg5[%c0, %c0_0, %c0_1], %0 {strides = array<i32>} : memref<20x16x20xf32, #tpu.memory_space<vmem>>, vector<20x16x20xf32>,
    %c0_2 = arith.constant 0 : index
    %c0_3 = arith.constant 0 : index
    %c0_4 = arith.constant 0 : index
    %c0_5 = arith.constant 0 : index
    %2 = vector.load %arg1[%c0_2, %c0_3, %c0_4, %c0_5] : memref<1x16x16x4xf32, #tpu.memory_space<vmem>>, vector<1x16x14x4xf32>
    %3 = vector.shape_cast %2 : vector<1x16x14x4xf32> to vector<16x14x4xf32>
    %c2 = arith.constant 2 : index
    %c2_6 = arith.constant 2 : index
    %c0_7 = arith.constant 0 : index
    %4 = vector.load %arg5[%c2, %c2_6, %c0_7] : memref<20x16x20xf32, #tpu.memory_space<vmem>>, vector<16x14x4xf32>
    tpu.vector_store %arg5[%c2, %c2_6, %c0_7], %3 {strides = array<i32>} : memref<20x16x20xf32, #tpu.memory_space<vmem>>, vector<16x14x4xf32>,
    %c0_8 = arith.constant 0 : index
    %c0_9 = arith.constant 0 : index
    %c0_10 = arith.constant 0 : index
    %c0_11 = arith.constant 0 : index
    %5 = vector.load %arg1[%c0_8, %c0_9, %c0_10, %c0_11] : memref<1x16x16x4xf32, #tpu.memory_space<vmem>>, vector<1x16x15x4xf32>
    %6 = vector.shape_cast %5 : vector<1x16x15x4xf32> to vector<16x15x4xf32>
    %c2_12 = arith.constant 2 : index
    %c1 = arith.constant 1 : index
    %c4 = arith.constant 4 : index
    %7 = vector.load %arg5[%c2_12, %c1, %c4] : memref<20x16x20xf32, #tpu.memory_space<vmem>>, vector<16x15x4xf32>
    tpu.vector_store %arg5[%c2_12, %c1, %c4], %6 {strides = array<i32>} : memref<20x16x20xf32, #tpu.memory_space<vmem>>, vector<16x15x4xf32>,
    %c0_13 = arith.constant 0 : index
    %c0_14 = arith.constant 0 : index
    %c0_15 = arith.constant 0 : index
    %c0_16 = arith.constant 0 : index
    %8 = vector.load %arg1[%c0_13, %c0_14, %c0_15, %c0_16] : memref<1x16x16x4xf32, #tpu.memory_space<vmem>>, vector<1x16x16x4xf32>
    %9 = vector.shape_cast %8 : vector<1x16x16x4xf32> to vector<16x16x4xf32>
    %c2_17 = arith.constant 2 : index
    %c0_18 = arith.constant 0 : index
    %c8 = arith.constant 8 : index
    %10 = vector.load %arg5[%c2_17, %c0_18, %c8] : memref<20x16x20xf32, #tpu.memory_space<vmem>>, vector<16x16x4xf32>
    tpu.vector_store %arg5[%c2_17, %c0_18, %c8], %9 {strides = array<i32>} : memref<20x16x20xf32, #tpu.memory_space<vmem>>, vector<16x16x4xf32>,
    %c0_19 = arith.constant 0 : index
    %c0_20 = arith.constant 0 : index
    %c1_21 = arith.constant 1 : index
    %c0_22 = arith.constant 0 : index
    %11 = vector.load %arg1[%c0_19, %c0_20, %c1_21, %c0_22] : memref<1x16x16x4xf32, #tpu.memory_space<vmem>>, vector<1x16x15x4xf32>
    %12 = vector.shape_cast %11 : vector<1x16x15x4xf32> to vector<16x15x4xf32>
    %c2_23 = arith.constant 2 : index
    %c0_24 = arith.constant 0 : index
    %c12 = arith.constant 12 : index
    %13 = vector.load %arg5[%c2_23, %c0_24, %c12] : memref<20x16x20xf32, #tpu.memory_space<vmem>>, vector<16x15x4xf32>
    tpu.vector_store %arg5[%c2_23, %c0_24, %c12], %12 {strides = array<i32>} : memref<20x16x20xf32, #tpu.memory_space<vmem>>, vector<16x15x4xf32>,
    %c0_25 = arith.constant 0 : index
    %c0_26 = arith.constant 0 : index
    %c2_27 = arith.constant 2 : index
    %c0_28 = arith.constant 0 : index
    %14 = vector.load %arg1[%c0_25, %c0_26, %c2_27, %c0_28] : memref<1x16x16x4xf32, #tpu.memory_space<vmem>>, vector<1x16x14x4xf32>
    %15 = vector.shape_cast %14 : vector<1x16x14x4xf32> to vector<16x14x4xf32>
    %c2_29 = arith.constant 2 : index
    %c0_30 = arith.constant 0 : index
    %c16 = arith.constant 16 : index
    %16 = vector.load %arg5[%c2_29, %c0_30, %c16] : memref<20x16x20xf32, #tpu.memory_space<vmem>>, vector<16x14x4xf32>
    tpu.vector_store %arg5[%c2_29, %c0_30, %c16], %15 {strides = array<i32>} : memref<20x16x20xf32, #tpu.memory_space<vmem>>, vector<16x14x4xf32>,
    %c0_31 = arith.constant 0 : index
    %c0_32 = arith.constant 0 : index
    %17 = vector.load %arg3[%c0_31, %c0_32] : memref<1x128xf32, #tpu.memory_space<vmem>>, vector<1x128xf32>
    %c0_33 = arith.constant 0 : index
    %c0_34 = arith.constant 0 : index
    %c0_35 = arith.constant 0 : index
    %18 = vector.load %arg5[%c0_33, %c0_34, %c0_35] : memref<20x16x20xf32, #tpu.memory_space<vmem>>, vector<8x16x20xf32>
    %19 = vector.shape_cast %18 : vector<8x16x20xf32> to vector<128x20xf32>
    %20 = arith.truncf %19 : vector<128x20xf32> to vector<128x20xbf16>
    %c0_36 = arith.constant 0 : index
    %c0_37 = arith.constant 0 : index
    %c0_38 = arith.constant 0 : index
    %21 = vector.load %arg2[%c0_36, %c0_37, %c0_38] : memref<5x20x128xbf16, #tpu.memory_space<vmem>>, vector<1x20x128xbf16>
    %22 = vector.shape_cast %21 : vector<1x20x128xbf16> to vector<20x128xbf16>
    %cst_39 = arith.constant dense<0.000000e+00> : vector<128x128xf32>
    %23 = tpu.matmul %20, %22, %cst_39 {dimension_numbers = #tpu.dot_dimension_numbers<[1], [0], [0], [1], [0, 0, 1, 1], [], []>} : vector<128x20xbf16>, vector<20x128xbf16>, vector<128x128xf32> -> vector<128x128xf32>
    %c1_40 = arith.constant 1 : index
    %c0_41 = arith.constant 0 : index
    %c0_42 = arith.constant 0 : index
    %24 = vector.load %arg5[%c1_40, %c0_41, %c0_42] : memref<20x16x20xf32, #tpu.memory_space<vmem>>, vector<8x16x20xf32>
    %25 = vector.shape_cast %24 : vector<8x16x20xf32> to vector<128x20xf32>
    %26 = arith.truncf %25 : vector<128x20xf32> to vector<128x20xbf16>
    %c1_43 = arith.constant 1 : index
    %c0_44 = arith.constant 0 : index
    %c0_45 = arith.constant 0 : index
    %27 = vector.load %arg2[%c1_43, %c0_44, %c0_45] : memref<5x20x128xbf16, #tpu.memory_space<vmem>>, vector<1x20x128xbf16>
    %28 = vector.shape_cast %27 : vector<1x20x128xbf16> to vector<20x128xbf16>
    %cst_46 = arith.constant dense<0.000000e+00> : vector<128x128xf32>
    %29 = tpu.matmul %26, %28, %cst_46 {dimension_numbers = #tpu.dot_dimension_numbers<[1], [0], [0], [1], [0, 0, 1, 1], [], []>} : vector<128x20xbf16>, vector<20x128xbf16>, vector<128x128xf32> -> vector<128x128xf32>
    %30 = arith.addf %23, %29 : vector<128x128xf32>
    %c2_47 = arith.constant 2 : index
    %c0_48 = arith.constant 0 : index
    %c0_49 = arith.constant 0 : index
    %31 = vector.load %arg5[%c2_47, %c0_48, %c0_49] : memref<20x16x20xf32, #tpu.memory_space<vmem>>, vector<8x16x20xf32>
    %32 = vector.shape_cast %31 : vector<8x16x20xf32> to vector<128x20xf32>
    %33 = arith.truncf %32 : vector<128x20xf32> to vector<128x20xbf16>
    %c2_50 = arith.constant 2 : index
    %c0_51 = arith.constant 0 : index
    %c0_52 = arith.constant 0 : index
    %34 = vector.load %arg2[%c2_50, %c0_51, %c0_52] : memref<5x20x128xbf16, #tpu.memory_space<vmem>>, vector<1x20x128xbf16>
    %35 = vector.shape_cast %34 : vector<1x20x128xbf16> to vector<20x128xbf16>
    %cst_53 = arith.constant dense<0.000000e+00> : vector<128x128xf32>
    %36 = tpu.matmul %33, %35, %cst_53 {dimension_numbers = #tpu.dot_dimension_numbers<[1], [0], [0], [1], [0, 0, 1, 1], [], []>} : vector<128x20xbf16>, vector<20x128xbf16>, vector<128x128xf32> -> vector<128x128xf32>
    %37 = arith.addf %30, %36 : vector<128x128xf32>
    %c3 = arith.constant 3 : index
    %c0_54 = arith.constant 0 : index
    %c0_55 = arith.constant 0 : index
    %38 = vector.load %arg5[%c3, %c0_54, %c0_55] : memref<20x16x20xf32, #tpu.memory_space<vmem>>, vector<8x16x20xf32>
    %39 = vector.shape_cast %38 : vector<8x16x20xf32> to vector<128x20xf32>
    %40 = arith.truncf %39 : vector<128x20xf32> to vector<128x20xbf16>
    %c3_56 = arith.constant 3 : index
    %c0_57 = arith.constant 0 : index
    %c0_58 = arith.constant 0 : index
    %41 = vector.load %arg2[%c3_56, %c0_57, %c0_58] : memref<5x20x128xbf16, #tpu.memory_space<vmem>>, vector<1x20x128xbf16>
    %42 = vector.shape_cast %41 : vector<1x20x128xbf16> to vector<20x128xbf16>
    %cst_59 = arith.constant dense<0.000000e+00> : vector<128x128xf32>
    %43 = tpu.matmul %40, %42, %cst_59 {dimension_numbers = #tpu.dot_dimension_numbers<[1], [0], [0], [1], [0, 0, 1, 1], [], []>} : vector<128x20xbf16>, vector<20x128xbf16>, vector<128x128xf32> -> vector<128x128xf32>
    %44 = arith.addf %37, %43 : vector<128x128xf32>
    %c4_60 = arith.constant 4 : index
    %c0_61 = arith.constant 0 : index
    %c0_62 = arith.constant 0 : index
    %45 = vector.load %arg5[%c4_60, %c0_61, %c0_62] : memref<20x16x20xf32, #tpu.memory_space<vmem>>, vector<8x16x20xf32>
    %46 = vector.shape_cast %45 : vector<8x16x20xf32> to vector<128x20xf32>
    %47 = arith.truncf %46 : vector<128x20xf32> to vector<128x20xbf16>
    %c4_63 = arith.constant 4 : index
    %c0_64 = arith.constant 0 : index
    %c0_65 = arith.constant 0 : index
    %48 = vector.load %arg2[%c4_63, %c0_64, %c0_65] : memref<5x20x128xbf16, #tpu.memory_space<vmem>>, vector<1x20x128xbf16>
    %49 = vector.shape_cast %48 : vector<1x20x128xbf16> to vector<20x128xbf16>
    %cst_66 = arith.constant dense<0.000000e+00> : vector<128x128xf32>
    %50 = tpu.matmul %47, %49, %cst_66 {dimension_numbers = #tpu.dot_dimension_numbers<[1], [0], [0], [1], [0, 0, 1, 1], [], []>} : vector<128x20xbf16>, vector<20x128xbf16>, vector<128x128xf32> -> vector<128x128xf32>
    %51 = arith.addf %44, %50 : vector<128x128xf32>
    %52 = vector.broadcast %17 : vector<1x128xf32> to vector<128x128xf32>
    %53 = arith.addf %51, %52 : vector<128x128xf32>
    %cst_67 = arith.constant 0.000000e+00 : f32
    %54 = vector.broadcast %cst_67 : f32 to vector<128x128xf32>
    %55 = arith.maximumf %53, %54 : vector<128x128xf32>
    %c0_68 = arith.constant 0 : index
    %c0_69 = arith.constant 0 : index
    %c0_70 = arith.constant 0 : index
    %56 = vector.load %arg4[%c0_68, %c0_69, %c0_70] : memref<1x256x128xf32, #tpu.memory_space<vmem>>, vector<1x128x128xf32>
    %57 = vector.shape_cast %56 : vector<1x128x128xf32> to vector<128x128xf32>
    %58 = vector.shape_cast %55 : vector<128x128xf32> to vector<1x128x128xf32>
    tpu.vector_store %arg4[%c0_68, %c0_69, %c0_70], %58 {strides = array<i32>} : memref<1x256x128xf32, #tpu.memory_space<vmem>>, vector<1x128x128xf32>,
    %c8_71 = arith.constant 8 : index
    %c0_72 = arith.constant 0 : index
    %c0_73 = arith.constant 0 : index
    %59 = vector.load %arg5[%c8_71, %c0_72, %c0_73] : memref<20x16x20xf32, #tpu.memory_space<vmem>>, vector<8x16x20xf32>
    %60 = vector.shape_cast %59 : vector<8x16x20xf32> to vector<128x20xf32>
    %61 = arith.truncf %60 : vector<128x20xf32> to vector<128x20xbf16>
    %c0_74 = arith.constant 0 : index
    %c0_75 = arith.constant 0 : index
    %c0_76 = arith.constant 0 : index
    %62 = vector.load %arg2[%c0_74, %c0_75, %c0_76] : memref<5x20x128xbf16, #tpu.memory_space<vmem>>, vector<1x20x128xbf16>
    %63 = vector.shape_cast %62 : vector<1x20x128xbf16> to vector<20x128xbf16>
    %cst_77 = arith.constant dense<0.000000e+00> : vector<128x128xf32>
    %64 = tpu.matmul %61, %63, %cst_77 {dimension_numbers = #tpu.dot_dimension_numbers<[1], [0], [0], [1], [0, 0, 1, 1], [], []>} : vector<128x20xbf16>, vector<20x128xbf16>, vector<128x128xf32> -> vector<128x128xf32>
    %c9 = arith.constant 9 : index
    %c0_78 = arith.constant 0 : index
    %c0_79 = arith.constant 0 : index
    %65 = vector.load %arg5[%c9, %c0_78, %c0_79] : memref<20x16x20xf32, #tpu.memory_space<vmem>>, vector<8x16x20xf32>
    %66 = vector.shape_cast %65 : vector<8x16x20xf32> to vector<128x20xf32>
    %67 = arith.truncf %66 : vector<128x20xf32> to vector<128x20xbf16>
    %c1_80 = arith.constant 1 : index
    %c0_81 = arith.constant 0 : index
    %c0_82 = arith.constant 0 : index
    %68 = vector.load %arg2[%c1_80, %c0_81, %c0_82] : memref<5x20x128xbf16, #tpu.memory_space<vmem>>, vector<1x20x128xbf16>
    %69 = vector.shape_cast %68 : vector<1x20x128xbf16> to vector<20x128xbf16>
    %cst_83 = arith.constant dense<0.000000e+00> : vector<128x128xf32>
    %70 = tpu.matmul %67, %69, %cst_83 {dimension_numbers = #tpu.dot_dimension_numbers<[1], [0], [0], [1], [0, 0, 1, 1], [], []>} : vector<128x20xbf16>, vector<20x128xbf16>, vector<128x128xf32> -> vector<128x128xf32>
    %71 = arith.addf %64, %70 : vector<128x128xf32>
    %c10 = arith.constant 10 : index
    %c0_84 = arith.constant 0 : index
    %c0_85 = arith.constant 0 : index
    %72 = vector.load %arg5[%c10, %c0_84, %c0_85] : memref<20x16x20xf32, #tpu.memory_space<vmem>>, vector<8x16x20xf32>
    %73 = vector.shape_cast %72 : vector<8x16x20xf32> to vector<128x20xf32>
    %74 = arith.truncf %73 : vector<128x20xf32> to vector<128x20xbf16>
    %c2_86 = arith.constant 2 : index
    %c0_87 = arith.constant 0 : index
    %c0_88 = arith.constant 0 : index
    %75 = vector.load %arg2[%c2_86, %c0_87, %c0_88] : memref<5x20x128xbf16, #tpu.memory_space<vmem>>, vector<1x20x128xbf16>
    %76 = vector.shape_cast %75 : vector<1x20x128xbf16> to vector<20x128xbf16>
    %cst_89 = arith.constant dense<0.000000e+00> : vector<128x128xf32>
    %77 = tpu.matmul %74, %76, %cst_89 {dimension_numbers = #tpu.dot_dimension_numbers<[1], [0], [0], [1], [0, 0, 1, 1], [], []>} : vector<128x20xbf16>, vector<20x128xbf16>, vector<128x128xf32> -> vector<128x128xf32>
    %78 = arith.addf %71, %77 : vector<128x128xf32>
    %c11 = arith.constant 11 : index
    %c0_90 = arith.constant 0 : index
    %c0_91 = arith.constant 0 : index
    %79 = vector.load %arg5[%c11, %c0_90, %c0_91] : memref<20x16x20xf32, #tpu.memory_space<vmem>>, vector<8x16x20xf32>
    %80 = vector.shape_cast %79 : vector<8x16x20xf32> to vector<128x20xf32>
    %81 = arith.truncf %80 : vector<128x20xf32> to vector<128x20xbf16>
    %c3_92 = arith.constant 3 : index
    %c0_93 = arith.constant 0 : index
    %c0_94 = arith.constant 0 : index
    %82 = vector.load %arg2[%c3_92, %c0_93, %c0_94] : memref<5x20x128xbf16, #tpu.memory_space<vmem>>, vector<1x20x128xbf16>
    %83 = vector.shape_cast %82 : vector<1x20x128xbf16> to vector<20x128xbf16>
    %cst_95 = arith.constant dense<0.000000e+00> : vector<128x128xf32>
    %84 = tpu.matmul %81, %83, %cst_95 {dimension_numbers = #tpu.dot_dimension_numbers<[1], [0], [0], [1], [0, 0, 1, 1], [], []>} : vector<128x20xbf16>, vector<20x128xbf16>, vector<128x128xf32> -> vector<128x128xf32>
    %85 = arith.addf %78, %84 : vector<128x128xf32>
    %c12_96 = arith.constant 12 : index
    %c0_97 = arith.constant 0 : index
    %c0_98 = arith.constant 0 : index
    %86 = vector.load %arg5[%c12_96, %c0_97, %c0_98] : memref<20x16x20xf32, #tpu.memory_space<vmem>>, vector<8x16x20xf32>
    %87 = vector.shape_cast %86 : vector<8x16x20xf32> to vector<128x20xf32>
    %88 = arith.truncf %87 : vector<128x20xf32> to vector<128x20xbf16>
    %c4_99 = arith.constant 4 : index
    %c0_100 = arith.constant 0 : index
    %c0_101 = arith.constant 0 : index
    %89 = vector.load %arg2[%c4_99, %c0_100, %c0_101] : memref<5x20x128xbf16, #tpu.memory_space<vmem>>, vector<1x20x128xbf16>
    %90 = vector.shape_cast %89 : vector<1x20x128xbf16> to vector<20x128xbf16>
    %cst_102 = arith.constant dense<0.000000e+00> : vector<128x128xf32>
    %91 = tpu.matmul %88, %90, %cst_102 {dimension_numbers = #tpu.dot_dimension_numbers<[1], [0], [0], [1], [0, 0, 1, 1], [], []>} : vector<128x20xbf16>, vector<20x128xbf16>, vector<128x128xf32> -> vector<128x128xf32>
    %92 = arith.addf %85, %91 : vector<128x128xf32>
    %93 = vector.broadcast %17 : vector<1x128xf32> to vector<128x128xf32>
    %94 = arith.addf %92, %93 : vector<128x128xf32>
    %cst_103 = arith.constant 0.000000e+00 : f32
    %95 = vector.broadcast %cst_103 : f32 to vector<128x128xf32>
    %96 = arith.maximumf %94, %95 : vector<128x128xf32>
    %c0_104 = arith.constant 0 : index
    %c128 = arith.constant 128 : index
    %c0_105 = arith.constant 0 : index
    %97 = vector.load %arg4[%c0_104, %c128, %c0_105] : memref<1x256x128xf32, #tpu.memory_space<vmem>>, vector<1x128x128xf32>
    %98 = vector.shape_cast %97 : vector<1x128x128xf32> to vector<128x128xf32>
    %99 = vector.shape_cast %96 : vector<128x128xf32> to vector<1x128x128xf32>
    tpu.vector_store %arg4[%c0_104, %c128, %c0_105], %99 {strides = array<i32>} : memref<1x256x128xf32, #tpu.memory_space<vmem>>, vector<1x128x128xf32>,
    return
  }
  func.func @transform_0(%arg0: i32) -> (i32, i32, i32, i32) {
    %c0_i32 = arith.constant 0 : i32
    %c0_i32_0 = arith.constant 0 : i32
    %c0_i32_1 = arith.constant 0 : i32
    %c0_i32_2 = arith.constant 0 : i32
    return %arg0, %c0_i32, %c0_i32_0, %c0_i32_1 : i32, i32, i32, i32
  }
  func.func @transform_1(%arg0: i32) -> (i32, i32, i32) {
    %c0_i32 = arith.constant 0 : i32
    %c0_i32_0 = arith.constant 0 : i32
    %c0_i32_1 = arith.constant 0 : i32
    %c0_i32_2 = arith.constant 0 : i32
    return %c0_i32, %c0_i32_0, %c0_i32_1 : i32, i32, i32
  }
  func.func @transform_2(%arg0: i32) -> (i32, i32) {
    %c0_i32 = arith.constant 0 : i32
    %c0_i32_0 = arith.constant 0 : i32
    %c0_i32_1 = arith.constant 0 : i32
    return %c0_i32, %c0_i32_0 : i32, i32
  }
  func.func @transform_3(%arg0: i32) -> (i32, i32, i32) {
    %c0_i32 = arith.constant 0 : i32
    %c0_i32_0 = arith.constant 0 : i32
    %c0_i32_1 = arith.constant 0 : i32
    return %arg0, %c0_i32, %c0_i32_0 : i32, i32, i32
  }
}

</mosaic_0001>

<bundles_post_ra>
// kernel: tpu_custom_call.1
= control target key start
LH: loop header
LB: loop body
LE: loop exit
PB: predicated region body
PF: predicated region fallthrough
CT: control target
= control target key end

     0   :  { %8 = vsyncpa [#allocation4], 0  ;;  %s3891_s0 = inlined_call_operand.vmem [shape: f32[2,16,16,4], index: 0, kind: input, shape index: {}]   ;;  %s3892_s1 = inlined_call_operand.vmem [shape: bf16[5,20,128], index: 1, kind: input, shape index: {}]   ;;  %s3893_s2 = inlined_call_operand.vmem [shape: f32[1,128], index: 2, kind: input, shape index: {}]   ;;  %s3894_s3 = inlined_call_operand.hbm [shape: f32[2,256,128], index: 3, kind: output, shape index: {}]  }
   0x1   :  { %10 = vsyncpa [#allocation4 + $0x1], 0  ;;  %s2768_s12 = smov 0   ;;  %s2770_s13 = smov 0  }
   0x2   :  { %s2772_s14 = smov 0   ;;  %s2774_s15 = smov 0  }
   0x3 LB: > { %s2789_s16 = sadd.s32 4294967295, %s2740_s15   ;;  %s2460_s17 = sadd.s32 4294967294, %s2740_s15   ;;  %s2740_s15 = sphi %s2774_s15, %s3900_s15   ;;  %s2736_s14 = sphi %s2772_s14, %s3899_s14   ;;  %s2732_s13 = sphi %s2770_s13, %s3898_s13   ;;  %s2728_s12 = sphi %s2768_s12, %s3897_s12  }
   0x4   : > { %s2793_s18 = sadd.s32 1, %s2740_s15   ;;  %s91_s19 = sadd.s32 1, %s2736_s14 }
   0x5   : > { %s88_s20 = ssub.s32 %s2740_s15, %s2793_s18  ;;  %p101_p0 = scmp.ne.s32.totalorder %s2736_s14, %s2732_s13 }
   0x6   : > { %p89_p1 = scmp.eq.s32.totalorder %s88_s20, 0  ;;  %p102_p2 = scmp.eq.s32.totalorder %s2789_s16, 1 }
   0x7   : > { %p107_p3 = scmp.ne.s32.totalorder %s2732_s13, %s2728_s12  ;;  %p108_p4 = scmp.eq.s32.totalorder %s2460_s17, 1 }
   0x8   : > { %s2804_s21 = scalar_select %p89_p1, %s2736_s14, %s91_s19  }
   0x9   : > { %p2806_p5 = por %p102_p2, %p101_p0  ;;  %p2810_p6 = por %p108_p4, %p107_p3 }
   0xa   : > { %p2463_p7 = scmp.ge.s32.totalorder %s2740_s15, 1  ;;  %p140_p8 = scmp.lt.s32.totalorder %s2740_s15, 3 }
   0xc   : > { %p141_p9 = pnand %p2463_p7, %p140_p8 }
   0xd   : > { %p164_p10 = scmp.lt.s32.totalorder (!%p141_p9), %s2789_s16, 1  ;;  %s2742_s29 = smov (!%p141_p9), 8  }
   0xe   : > { %144 = sbr.rel (%p141_p9) target bundleno = 736 (0x2e0), region = 32  ;;  %s2743_s30 = smov (!%p141_p9), 4  }
   0xf   : > { %s2744_s4 = smov (!%p141_p9), 12   ;;  %s2745_s5 = smov (!%p141_p9), 16  }
  0x10   : > { %s2698_s26 = scalar_lea.hbm (!%p141_p9), %s3894_s3, 512 }
  0x13   : > { %s165_s24 = scalar_select %p164_p10, %s2789_s16, 1  ;;  %vm170_vm0 = vcmask 162816   ;;  %vm244_vm1 = vcmask 31744   ;;  %v2746_v26 = vmov 0.0   ;;  %vm438_vm2 = vcmask 64544   ;;  %v2618_v50 = vld [vmem:[%s3892_s1 + $0xc] sm:$0xff] }
  0x14   : > { %179 = vst.msk [vmem:[#allocation2 + $0x40] sm:$0xff] %vm170_vm0, %v2746_v26  ;;  %v2469_v41 = vld [vmem:[%s3892_s1 + $0x14] sm:$0x3]  ;;  %vm1143_vm3 = vcmask 1041408   ;;  %vm246_vm4 = vcmask 29696   ;;  %vm440_vm5 = vcmask 63520  }
  0x15   : > { %s2616_s25 = sshll.u32 %s165_s24, 8  ;;  %180 = vst.msk [vmem:[#allocation2 + $0x48] sm:$0xff] %vm170_vm0, %v2746_v26  ;;  %v1115_v43 = vunpack.c.l.b16 %v2469_v41  ;;  %vm632_vm6 = vcmask 97344   ;;  %v1080_v60 = vld [vmem:[%s3892_s1 + $0x8] sm:$0x3]  ;;  %vm827_vm7 = vcmask 129120  }
  0x16   : > { %s2821_s28 = scalar_lea.vmem %s3891_s0, %s2616_s25  ;;  %171 = vst.msk [vmem:[#allocation2] sm:$0xff] %vm170_vm0, %v2746_v26  ;;  %v1201_v63 = vunpack.c.l.b16 %v1080_v60  ;;  %vm825_vm8 = vcmask 130144   ;;  %vm1021_vm9 = vcmask 160896   ;;  %vm1019_vm10 = vcmask 162944  }
  0x17   : > { %v2824_v0 = vld [vmem:[%s2821_s28 + $0x30] sm:$0xff]  ;;  %v282_v1 = vld [vmem:[%s2821_s28 + $0x20] sm:$0xff]  ;;  %v479_v2 = vld [vmem:[%s2821_s28 + $0x38] sm:$0xff]  ;;  %172 = vst.msk [vmem:[#allocation2 + $0x8] sm:$0xff] %vm170_vm0, %v2746_v26  ;;  %v1117_v45 = vpack.c.b16 %v1115_v43, %v1115_v43 }
  0x18   : > { %548 = vrot.lane.b32.xlu1 %v2824_v0, %s2742_s29  ;;  %354 = vrot.lane.b32.xlu0 %v2824_v0, %s2743_s30  ;;  %v285_v3 = vld [vmem:[%s2821_s28 + $0x38] sm:$0x7f]  ;;  %v283_v4 = vld [vmem:[%s2821_s28 + $0x28] sm:$0x7f]  ;;  %250 = vst.msk [vmem:[#allocation2 + $0x42] sm:$0xff] %vm244_vm1, %v282_v1 }
  0x19   : > { %350 = vrot.lane.b32.xlu2 %v282_v1, %s2743_s30  ;;  %v672_v5 = vld [vmem:[%s2821_s28 + $0x39] sm:$0x7f]  ;;  %v671_v6 = vld [vmem:[%s2821_s28 + $0x31] sm:$0xff]  ;;  %v477_v8 = vld [vmem:[%s2821_s28 + $0x28] sm:$0xff]  ;;  %173 = vst.msk [vmem:[#allocation2 + $0x10] sm:$0xff] %vm170_vm0, %v2746_v26  ;;  %v1145_v46 = vsel %vm1143_vm3, %v1117_v45, 0 }
  0x1a   : > { %v865_v7 = vld [vmem:[%s2821_s28 + $0x32] sm:$0xff]  ;;  %v866_v9 = vld [vmem:[%s2821_s28 + $0x3a] sm:$0x3f]  ;;  %v670_v10 = vld [vmem:[%s2821_s28 + $0x29] sm:$0x7f]  ;;  %174 = vst.msk [vmem:[#allocation2 + $0x18] sm:$0xff] %vm170_vm0, %v2746_v26  ;;  %2628 = vmatpush.bf16.msra.mxu2 %v1145_v46  ;;  %1153 = vmatpush.bf16.msra.mxu0 %v1145_v46 }
  0x1b   : > { %v669_v11 = vld [vmem:[%s2821_s28 + $0x21] sm:$0xff]  ;;  %v864_v14 = vld [vmem:[%s2821_s28 + $0x2a] sm:$0x3f]  ;;  %175 = vst.msk [vmem:[#allocation2 + $0x20] sm:$0xff] %vm170_vm0, %v2746_v26  ;;  %v2911_v29 = vld [vmem:[%s2821_s28 + $0x50] sm:$0xff] }
  0x1c   : > { %v863_v12 = vld [vmem:[%s2821_s28 + $0x22] sm:$0xff]  ;;  %v868_v20 = vld [vmem:[%s2821_s28 + $0x4a] sm:$0x3f]  ;;  %176 = vst.msk [vmem:[#allocation2 + $0x28] sm:$0xff] %vm170_vm0, %v2746_v26  ;;  %v289_v30 = vld [vmem:[%s2821_s28 + $0x58] sm:$0x7f] }
  0x1d   : > { %v2856_v13 = vld [vmem:[%s2821_s28 + $0x40] sm:$0xff]  ;;  %v287_v15 = vld [vmem:[%s2821_s28 + $0x48] sm:$0x7f]  ;;  %177 = vst.msk [vmem:[#allocation2 + $0x30] sm:$0xff] %vm170_vm0, %v2746_v26  ;;  %v483_v31 = vld [vmem:[%s2821_s28 + $0x58] sm:$0xff] }
  0x1e   : > { %v481_v16 = vld [vmem:[%s2821_s28 + $0x48] sm:$0xff]  ;;  %v2878_v22 = vld [vmem:[%s2821_s28] sm:$0xff]  ;;  %178 = vst.msk [vmem:[#allocation2 + $0x38] sm:$0xff] %vm170_vm0, %v2746_v26  ;;  %v676_v33 = vld [vmem:[%s2821_s28 + $0x59] sm:$0x7f]  ;;  %2629 = vmatpush.bf16.msra.mxu2 %v2618_v50  ;;  %1154 = vmatpush.bf16.msra.mxu0 %v2618_v50 }
  0x1f   : > { %v673_v17 = vld [vmem:[%s2821_s28 + $0x41] sm:$0xff]  ;;  %v674_v19 = vld [vmem:[%s2821_s28 + $0x49] sm:$0x7f]  ;;  %181 = vst.msk [vmem:[#allocation2 + $0x50] sm:$0xff] %vm170_vm0, %v2746_v26  ;;  %v675_v34 = vld [vmem:[%s2821_s28 + $0x51] sm:$0xff] }
  0x20   : > { %550 = vrot.lane.b32.xlu1 %v479_v2, %s2742_s29  ;;  %356 = vrot.lane.b32.xlu0 %v285_v3, %s2743_s30  ;;  %v867_v18 = vld [vmem:[%s2821_s28 + $0x42] sm:$0xff]  ;;  %v860_v27 = vld [vmem:[%s2821_s28 + $0xa] sm:$0x3f]  ;;  %182 = vst.msk [vmem:[#allocation2 + $0x58] sm:$0xff] %vm170_vm0, %v2746_v26 }
  0x21   : > { %352 = vrot.lane.b32.xlu2 %v283_v4, %s2743_s30  ;;  %v279_v21 = vld [vmem:[%s2821_s28 + $0x8] sm:$0x7f]  ;;  %183 = vst.msk [vmem:[#allocation2 + $0x60] sm:$0xff] %vm170_vm0, %v2746_v26  ;;  %v869_v35 = vld [vmem:[%s2821_s28 + $0x52] sm:$0xff]  ;;  %v870_v38 = vld [vmem:[%s2821_s28 + $0x5a] sm:$0x3f] }
  0x22   : > { %v665_v23 = vld [vmem:[%s2821_s28 + $0x1] sm:$0xff]  ;;  %v666_v25 = vld [vmem:[%s2821_s28 + $0x9] sm:$0x7f]  ;;  %184 = vst.msk [vmem:[#allocation2 + $0x68] sm:$0xff] %vm170_vm0, %v2746_v26  ;;  %v2967_v37 = vld [vmem:[%s2821_s28 + $0x10] sm:$0xff] }
  0x23   : > { %v473_v24 = vld [vmem:[%s2821_s28 + $0x8] sm:$0xff]  ;;  %185 = vst.msk [vmem:[#allocation2 + $0x70] sm:$0xff] %vm170_vm0, %v2746_v26  ;;  %v281_v39 = vld [vmem:[%s2821_s28 + $0x18] sm:$0x7f]  ;;  %v290_v62 = vld [vmem:[%s2821_s28 + $0x60] sm:$0xff] }
  0x24   : > { %v859_v28 = vld [vmem:[%s2821_s28 + $0x2] sm:$0xff]  ;;  %186 = vst.msk [vmem:[#allocation2 + $0x78] sm:$0xff] %vm170_vm0, %v2746_v26  ;;  %v475_v42 = vld [vmem:[%s2821_s28 + $0x18] sm:$0xff] }
  0x25   : > { %187 = vst.msk [vmem:[#allocation2 + $0x80] sm:$0xff] %vm170_vm0, %v2746_v26  ;;  %v667_v44 = vld [vmem:[%s2821_s28 + $0x11] sm:$0xff]  ;;  %v216_v49 = vld [vmem:[%s2821_s28 + $0x28] sm:$0x3f]  ;;  %v668_v54 = vld [vmem:[%s2821_s28 + $0x19] sm:$0x7f] }
  0x26   : > { %188 = vst.msk [vmem:[#allocation2 + $0x88] sm:$0xff] %vm170_vm0, %v2746_v26  ;;  %v218_v51 = vld [vmem:[%s2821_s28 + $0x38] sm:$0x3f]  ;;  %v220_v59 = vld [vmem:[%s2821_s28 + $0x48] sm:$0x3f]  ;;  %v3147_v60 = vld [vmem:[%s2821_s28 + $0xa0] sm:$0xff] }
  0x27   : > { %189 = vst.msk [vmem:[#allocation2 + $0x90] sm:$0xff] %vm170_vm0, %v2746_v26  ;;  %v861_v53 = vld [vmem:[%s2821_s28 + $0x12] sm:$0xff]  ;;  %v862_v55 = vld [vmem:[%s2821_s28 + $0x1a] sm:$0x3f]  ;;  %v291_v61 = vld [vmem:[%s2821_s28 + $0x68] sm:$0x7f] }
  0x28   : > { %743 = vrot.lane.b32.xlu1 %v672_v5, %s2744_s4  ;;  %741 = vrot.lane.b32.xlu0 %v671_v6, %s2744_s4  ;;  %190 = vst.msk [vmem:[#allocation2 + $0x98] sm:$0xff] %vm170_vm0, %v2746_v26  ;;  %v2617_v5 = vld [vmem:[%s3892_s1] sm:$0xff]  ;;  %v295_v45 = vld [vmem:[%s2821_s28 + $0x88] sm:$0x7f] }
  0x29   : > { %544 = vrot.lane.b32.xlu2 %v282_v1, %s2742_s29  ;;  %191 = vst.msk [vmem:[#allocation2 + $0xa0] sm:$0xff] %vm170_vm0, %v2746_v26  ;;  %v486_v1 = vld [vmem:[%s2821_s28 + $0x70] sm:$0xff]  ;;  %v489_v50 = vld [vmem:[%s2821_s28 + $0x88] sm:$0xff] }
  0x2a   : > { %192 = vst.msk [vmem:[#allocation2 + $0xa8] sm:$0xff] %vm170_vm0, %v2746_v26 }
  0x2b   : > { %193 = vst.msk [vmem:[#allocation2 + $0xb0] sm:$0xff] %vm170_vm0, %v2746_v26 }
  0x2c   : > { %194 = vst.msk [vmem:[#allocation2 + $0xb8] sm:$0xff] %vm170_vm0, %v2746_v26 }
  0x2d   : > { %195 = vst.msk [vmem:[#allocation2 + $0xc0] sm:$0xff] %vm170_vm0, %v2746_v26 }
  0x2e   : > { %196 = vst.msk [vmem:[#allocation2 + $0xc8] sm:$0xff] %vm170_vm0, %v2746_v26 }
  0x2f   : > { %197 = vst.msk [vmem:[#allocation2 + $0xd0] sm:$0xff] %vm170_vm0, %v2746_v26 }
  0x30   : > { %935 = vrot.lane.b32.xlu1 %v865_v7, %s2745_s5  ;;  %546 = vrot.lane.b32.xlu0 %v477_v8, %s2742_s29  ;;  %198 = vst.msk [vmem:[#allocation2 + $0xd8] sm:$0xff] %vm170_vm0, %v2746_v26  ;;  %v677_v7 = vld [vmem:[%s2821_s28 + $0x61] sm:$0xff] }
  0x31   : > { %937 = vrot.lane.b32.xlu2 %v866_v9, %s2745_s5  ;;  %199 = vst.msk [vmem:[#allocation2 + $0xe0] sm:$0xff] %vm170_vm0, %v2746_v26  ;;  %v485_v8 = vld [vmem:[%s2821_s28 + $0x68] sm:$0xff]  ;;  %v3068_v9 = vld [vmem:[%s2821_s28 + $0x80] sm:$0xff] }
  0x32   : > { %200 = vst.msk [vmem:[#allocation2 + $0xe8] sm:$0xff] %vm170_vm0, %v2746_v26 }
  0x33   : > { %201 = vst.msk [vmem:[#allocation2 + $0xf0] sm:$0xff] %vm170_vm0, %v2746_v26 }
  0x34   : > { %202 = vst.msk [vmem:[#allocation2 + $0xf8] sm:$0xff] %vm170_vm0, %v2746_v26 }
  0x35   : > { %203 = vst.msk [vmem:[#allocation2 + $0x100] sm:$0xff] %vm170_vm0, %v2746_v26 }
  0x36   : > { %204 = vst.msk [vmem:[#allocation2 + $0x108] sm:$0xff] %vm170_vm0, %v2746_v26 }
  0x37   : > { %205 = vst.msk [vmem:[#allocation2 + $0x110] sm:$0xff] %vm170_vm0, %v2746_v26 }
  0x38   : > { %739 = vrot.lane.b32.xlu1 %v670_v10, %s2744_s4  ;;  %737 = vrot.lane.b32.xlu0 %v669_v11, %s2744_s4  ;;  %206 = vst.msk [vmem:[#allocation2 + $0x118] sm:$0xff] %vm170_vm0, %v2746_v26  ;;  %v678_v10 = vld [vmem:[%s2821_s28 + $0x69] sm:$0x7f] }
  0x39   : > { %931 = vrot.lane.b32.xlu2 %v863_v12, %s2745_s5  ;;  %207 = vst.msk [vmem:[#allocation2 + $0x120] sm:$0xff] %vm170_vm0, %v2746_v26 }
  0x3a   : > { %208 = vst.msk [vmem:[#allocation2 + $0x128] sm:$0xff] %vm170_vm0, %v2746_v26 }
  0x3b   : > { %209 = vst.msk [vmem:[#allocation2 + $0x130] sm:$0xff] %vm170_vm0, %v2746_v26 }
  0x3c   : > { %210 = vst.msk [vmem:[#allocation2 + $0x138] sm:$0xff] %vm170_vm0, %v2746_v26  ;;  %v293_v26 = vld [vmem:[%s2821_s28 + $0x78] sm:$0x7f] }
  0x3d   : > { %252 = vst.msk [vmem:[#allocation2 + $0x52] sm:$0xff] %vm244_vm1, %v2824_v0  ;;  %v1203_v0 = vpack.c.b16 %v1201_v63, %v1201_v63 }
  0x3e   : > { %251 = vst.msk [vmem:[#allocation2 + $0x4a] sm:$0x3f] %vm246_vm4, %v216_v49  ;;  %v222_v49 = vld [vmem:[%s2821_s28 + $0x58] sm:$0x3f] }
  0x3f   : > { %253 = vst.msk [vmem:[#allocation2 + $0x5a] sm:$0x3f] %vm246_vm4, %v218_v51  ;;  %v1230_v2 = vsel %vm1143_vm3, %v1203_v0, 0  ;;  %v681_v51 = vld [vmem:[%s2821_s28 + $0x81] sm:$0xff] }
  0x40   : > { %358 = vrot.lane.b32.xlu1 %v2856_v13, %s2743_s30  ;;  %933 = vrot.lane.b32.xlu0 %v864_v14, %s2745_s5  ;;  %254 = vst.msk [vmem:[#allocation2 + $0x62] sm:$0xff] %vm244_vm1, %v2856_v13 }
  0x41   : > { %360 = vrot.lane.b32.xlu2 %v287_v15, %s2743_s30  ;;  %255 = vst.msk [vmem:[#allocation2 + $0x6a] sm:$0x3f] %vm246_vm4, %v220_v59  ;;  %2630 = vmatpush.bf16.msra.mxu3 %v1230_v2  ;;  %v871_v15 = vld [vmem:[%s2821_s28 + $0x62] sm:$0xff] }
  0x42   : > { %245 = vst.msk [vmem:[#allocation2 + $0x22] sm:$0xff] %vm244_vm1, %v2878_v22  ;;  %1238 = vmatpush.bf16.msra.mxu1 %v1230_v2  ;;  %v682_v59 = vld [vmem:[%s2821_s28 + $0x89] sm:$0x7f]  ;;  %v297_v2 = vld [vmem:[%s2821_s28 + $0x98] sm:$0x7f] }
  0x43   : > { %256 = vst.msk [vmem:[#allocation2 + $0x72] sm:$0xff] %vm244_vm1, %v2911_v29 }
  0x44   : > { %248 = vst.msk [vmem:[#allocation2 + $0x32] sm:$0xff] %vm244_vm1, %v2967_v37 }
  0x45   : > { %258 = vst.msk [vmem:[#allocation2 + $0x82] sm:$0xff] %vm244_vm1, %v290_v62  ;;  %2631 = vmatpush.bf16.msra.mxu3 %v2617_v5 }
  0x46   : > { %260 = vst.msk [vmem:[#allocation2 + $0x92] sm:$0xff] %vm244_vm1, %v486_v1  ;;  %1239 = vmatpush.bf16.msra.mxu1 %v2617_v5 }
  0x47   : > { %262 = vst.msk [vmem:[#allocation2 + $0xa2] sm:$0xff] %vm244_vm1, %v3068_v9 }
  0x48   : > { %554 = vrot.lane.b32.xlu1 %v481_v16, %s2742_s29  ;;  %552 = vrot.lane.b32.xlu0 %v2856_v13, %s2742_s29  ;;  %v872_v13 = vld [vmem:[%s2821_s28 + $0x6a] sm:$0x3f]  ;;  %v1054_v16 = vld [vmem:[#allocation2] sm:$0xff]  ;;  %257 = vst.msk [vmem:[#allocation2 + $0x7a] sm:$0x3f] %vm246_vm4, %v222_v49 }
  0x49   : > { %745 = vrot.lane.b32.xlu2 %v673_v17, %s2744_s4  ;;  %v1055_v17 = vld [vmem:[#allocation2 + $0x8] sm:$0xff]  ;;  %266 = vst.msk [vmem:[#allocation2 + $0xc2] sm:$0xff] %vm244_vm1, %v3147_v60 }
  0x4a   : > { %v880_v49 = vld [vmem:[%s2821_s28 + $0xaa] sm:$0x3f] }
  0x50   : > { %939 = vrot.lane.b32.xlu1 %v867_v18, %s2745_s5  ;;  %747 = vrot.lane.b32.xlu0 %v674_v19, %s2744_s4  ;;  %v1070_v18 = vpack.c.bf16 %v1055_v17, %v1054_v16  ;;  %v878_v16 = vld [vmem:[%s2821_s28 + $0x9a] sm:$0x3f]  ;;  %v877_v17 = vld [vmem:[%s2821_s28 + $0x92] sm:$0xff] }
  0x51   : > { %941 = vrot.lane.b32.xlu2 %v868_v20, %s2745_s5 }
  0x52   : > { %2486 = vmatmul.msk.bf16.vlgmr.msra.gmra.mxu1 %vm170_vm0, %v1070_v18  ;;  %v2511_v18 = vld [vmem:[%s3892_s1 + $0x2c] sm:$0x3] }
  0x58   : > { %344 = vrot.lane.b32.xlu1 %v279_v21, %s2743_s30  ;;  %342 = vrot.lane.b32.xlu0 %v2878_v22, %s2743_s30 }
  0x59   : > { %536 = vrot.lane.b32.xlu2 %v2878_v22, %s2742_s29 }
  0x60   : > { %729 = vrot.lane.b32.xlu1 %v665_v23, %s2744_s4  ;;  %538 = vrot.lane.b32.xlu0 %v473_v24, %s2742_s29  ;;  %v212_v24 = vld [vmem:[%s2821_s28 + $0x8] sm:$0x3f] }
  0x61   : > { %731 = vrot.lane.b32.xlu2 %v666_v25, %s2744_s4  ;;  %247 = vst.msk [vmem:[#allocation2 + $0x2a] sm:$0x3f] %vm246_vm4, %v212_v24 }
  0x68   : > { %925 = vrot.lane.b32.xlu1 %v860_v27, %s2745_s5  ;;  %923 = vrot.lane.b32.xlu0 %v859_v28, %s2745_s5  ;;  %v487_v27 = vld [vmem:[%s2821_s28 + $0x78] sm:$0xff] }
  0x69   : > { %362 = vrot.lane.b32.xlu2 %v2911_v29, %s2743_s30 }
  0x70   : > { %556 = vrot.lane.b32.xlu1 %v2911_v29, %s2742_s29  ;;  %364 = vrot.lane.b32.xlu0 %v289_v30, %s2743_s30  ;;  %v680_v30 = vld [vmem:[%s2821_s28 + $0x79] sm:$0x7f] }
  0x71   : > { %558 = vrot.lane.b32.xlu2 %v483_v31, %s2742_s29 }
  0x73   : > { %v351_v32 = vpop.permute.xlu2 %350 }
  0x74   : > { %444 = vst.msk [vmem:[#allocation2 + $0x41] sm:$0xff] %vm438_vm2, %v351_v32  ;;  %v679_v32 = vld [vmem:[%s2821_s28 + $0x71] sm:$0xff] }
  0x78   : > { %751 = vrot.lane.b32.xlu1 %v676_v33, %s2744_s4  ;;  %749 = vrot.lane.b32.xlu0 %v675_v34, %s2744_s4  ;;  %v1082_v33 = vld [vmem:[#allocation2 + $0x10] sm:$0xff]  ;;  %v1083_v34 = vld [vmem:[#allocation2 + $0x18] sm:$0xff] }
  0x79   : > { %943 = vrot.lane.b32.xlu2 %v869_v35, %s2745_s5  ;;  %v1098_v35 = vpack.c.bf16 %v1083_v34, %v1082_v33 }
  0x7b   : > { %v353_v36 = vpop.permute.xlu2 %352  ;;  %2474 = vmatmul.msk.bf16.vlgmr.msra.gmra.mxu0 %vm170_vm0, %v1098_v35  ;;  %2487 = vmatmul.msk.bf16.gmra.mxu1 %vm170_vm0, %v1098_v35 }
  0x7c   : > { %445 = vst.msk [vmem:[#allocation2 + $0x49] sm:$0x7f] %vm440_vm5, %v353_v36  ;;  %v873_v36 = vld [vmem:[%s2821_s28 + $0x72] sm:$0xff] }
  0x80   : > { %346 = vrot.lane.b32.xlu1 %v2967_v37, %s2743_s30  ;;  %945 = vrot.lane.b32.xlu0 %v870_v38, %s2745_s5 }
  0x81   : > { %348 = vrot.lane.b32.xlu2 %v281_v39, %s2743_s30 }
  0x83   : > { %v545_v40 = vpop.permute.xlu2 %544 }
  0x84   : > { %637 = vst.msk [vmem:[#allocation2 + $0x40] sm:$0xff] %vm632_vm6, %v545_v40 }
  0x88   : > { %542 = vrot.lane.b32.xlu1 %v475_v42, %s2742_s29  ;;  %540 = vrot.lane.b32.xlu0 %v2967_v37, %s2742_s29  ;;  %v3107_v37 = vld [vmem:[%s2821_s28 + $0x90] sm:$0xff] }
  0x89   : > { %733 = vrot.lane.b32.xlu2 %v667_v44, %s2744_s4  ;;  %264 = vst.msk [vmem:[#allocation2 + $0xb2] sm:$0xff] %vm244_vm1, %v3107_v37  ;;  %v874_v44 = vld [vmem:[%s2821_s28 + $0x7a] sm:$0x3f] }
  0x8a   : > { %v549_v47 = vpop.permute.xlu1 %548  ;;  %v355_v48 = vpop.permute.xlu0 %354 }
  0x8b   : > { %446 = vst.msk [vmem:[#allocation2 + $0x51] sm:$0xff] %vm438_vm2, %v355_v48  ;;  %v938_v52 = vpop.permute.xlu2 %937 }
  0x8c   : > { %639 = vst.msk [vmem:[#allocation2 + $0x50] sm:$0xff] %vm632_vm6, %v549_v47 }
  0x90   : > { %927 = vrot.lane.b32.xlu1 %v861_v53, %s2745_s5  ;;  %735 = vrot.lane.b32.xlu0 %v668_v54, %s2744_s4 }
  0x91   : > { %929 = vrot.lane.b32.xlu2 %v862_v55, %s2745_s5 }
  0x92   : > { %v551_v56 = vpop.permute.xlu1 %550  ;;  %v357_v57 = vpop.permute.xlu0 %356 }
  0x93   : > { %447 = vst.msk [vmem:[#allocation2 + $0x59] sm:$0x7f] %vm440_vm5, %v357_v57  ;;  %v3036_v58 = vpop.permute.xlu2 %931 }
  0x94   : > { %640 = vst.msk [vmem:[#allocation2 + $0x58] sm:$0xff] %vm632_vm6, %v551_v56 }
  0x98   : > { %368 = vrot.lane.b32.xlu1 %v291_v61, %s2743_s30  ;;  %366 = vrot.lane.b32.xlu0 %v290_v62, %s2743_s30  ;;  %v876_v61 = vld [vmem:[%s2821_s28 + $0x8a] sm:$0x3f] }
  0x99   : > { %560 = vrot.lane.b32.xlu2 %v290_v62, %s2742_s29 }
  0x9a   : > { %v744_v3 = vpop.permute.xlu1 %743  ;;  %v742_v4 = vpop.permute.xlu0 %741 }
  0x9b   : > { %834 = vst.msk [vmem:[#allocation2 + $0x58] sm:$0x7f] %vm827_vm7, %v744_v3  ;;  %v361_v6 = vpop.permute.xlu2 %360 }
  0x9c   : > { %833 = vst.msk [vmem:[#allocation2 + $0x50] sm:$0xff] %vm825_vm8, %v742_v4 }
  0x9d   : > { %1028 = vst.msk [vmem:[#allocation2 + $0x58] sm:$0x3f] %vm1021_vm9, %v938_v52 }
  0x9e   : > { %449 = vst.msk [vmem:[#allocation2 + $0x69] sm:$0x7f] %vm440_vm5, %v361_v6  ;;  %v683_v6 = vld [vmem:[%s2821_s28 + $0x91] sm:$0xff] }
  0xa0   : > { %753 = vrot.lane.b32.xlu1 %v677_v7, %s2744_s4  ;;  %562 = vrot.lane.b32.xlu0 %v485_v8, %s2742_s29  ;;  %v491_v7 = vld [vmem:[%s2821_s28 + $0x98] sm:$0xff]  ;;  %v3178_v8 = vld [vmem:[%s2821_s28 + $0xb0] sm:$0xff] }
  0xa1   : > { %755 = vrot.lane.b32.xlu2 %v678_v10, %s2744_s4  ;;  %268 = vst.msk [vmem:[#allocation2 + $0xd2] sm:$0xff] %vm244_vm1, %v3178_v8 }
  0xa2   : > { %v936_v11 = vpop.permute.xlu1 %935  ;;  %v547_v12 = vpop.permute.xlu0 %546 }
  0xa3   : > { %1027 = vst.msk [vmem:[#allocation2 + $0x50] sm:$0xff] %vm1019_vm10, %v936_v11  ;;  %v746_v14 = vpop.permute.xlu2 %745 }
  0xa4   : > { %638 = vst.msk [vmem:[#allocation2 + $0x48] sm:$0xff] %vm632_vm6, %v547_v12  ;;  %v1091_v22 = vld [vmem:[#allocation2 + $0x58] sm:$0xff] }
  0xa8   : > { %949 = vrot.lane.b32.xlu1 %v872_v13, %s2745_s5  ;;  %947 = vrot.lane.b32.xlu0 %v871_v15, %s2745_s5 }
  0xa9   : > { %370 = vrot.lane.b32.xlu2 %v486_v1, %s2743_s30 }
  0xaa   : > { %v740_v19 = vpop.permute.xlu1 %739  ;;  %v738_v20 = vpop.permute.xlu0 %737  ;;  %v1090_v21 = vld [vmem:[#allocation2 + $0x50] sm:$0xff] }
  0xab   : > { %832 = vst.msk [vmem:[#allocation2 + $0x48] sm:$0x7f] %vm827_vm7, %v740_v19  ;;  %v3085_v23 = vpack.c.bf16 %v1091_v22, %v1090_v21  ;;  %v942_v25 = vpop.permute.xlu2 %941  ;;  %v1444_v19 = vunpack.c.l.b16 %v2511_v18  ;;  %v303_v18 = vld [vmem:[%s2821_s28 + $0xc8] sm:$0x7f] }
  0xac   : > { %831 = vst.msk [vmem:[#allocation2 + $0x40] sm:$0xff] %vm825_vm8, %v738_v20 }
  0xad   : > { %1025 = vst.msk [vmem:[#allocation2 + $0x40] sm:$0xff] %vm1019_vm10, %v3036_v58  ;;  %2478 = vmatmul.msk.bf16.vlgmr.msra.gmra.mxu2 %vm170_vm0, %v3085_v23  ;;  %v875_v58 = vld [vmem:[%s2821_s28 + $0x82] sm:$0xff]  ;;  %v1446_v20 = vpack.c.b16 %v1444_v19, %v1444_v19  ;;  %v2623_v19 = vld [vmem:[%s3892_s1 + $0xc] sm:$0xff] }
  0xaf   : > { %v1473_v24 = vsel %vm1143_vm3, %v1446_v20, 0 }
  0xb0   : > { %564 = vrot.lane.b32.xlu1 %v486_v1, %s2742_s29  ;;  %372 = vrot.lane.b32.xlu0 %v293_v26, %s2743_s30  ;;  %v214_v1 = vld [vmem:[%s2821_s28 + $0x18] sm:$0x3f] }
  0xb1   : > { %566 = vrot.lane.b32.xlu2 %v487_v27, %s2742_s29  ;;  %249 = vst.msk [vmem:[#allocation2 + $0x3a] sm:$0x3f] %vm246_vm4, %v214_v1  ;;  %1481 = vmatpush.bf16.msrb.mxu3 %v1473_v24  ;;  %v2620_v27 = vld [vmem:[%s3892_s1 + $0x24] sm:$0xff] }
  0xb2   : > { %v359_v28 = vpop.permute.xlu1 %358  ;;  %v934_v29 = vpop.permute.xlu0 %933  ;;  %v689_v24 = vld [vmem:[%s2821_s28 + $0xc1] sm:$0xff] }
  0xb3   : > { %448 = vst.msk [vmem:[#allocation2 + $0x61] sm:$0xff] %vm438_vm2, %v359_v28  ;;  %v537_v31 = vpop.permute.xlu2 %536  ;;  %v299_v28 = vld [vmem:[%s2821_s28 + $0xa8] sm:$0x7f] }
  0xb4   : > { %1026 = vst.msk [vmem:[#allocation2 + $0x48] sm:$0x3f] %vm1021_vm9, %v934_v29  ;;  %v1062_v40 = vld [vmem:[#allocation2 + $0x40] sm:$0xff]  ;;  %v493_v29 = vld [vmem:[%s2821_s28 + $0xa8] sm:$0xff] }
  0xb5   : > { %1482 = vmatpush.bf16.msrb.mxu3 %v2620_v27 }
  0xb8   : > { %759 = vrot.lane.b32.xlu1 %v680_v30, %s2744_s4  ;;  %757 = vrot.lane.b32.xlu0 %v679_v32, %s2744_s4  ;;  %v2496_v30 = vld [vmem:[%s3892_s1 + $0x20] sm:$0x3] }
  0xb9   : > { %951 = vrot.lane.b32.xlu2 %v873_v36, %s2745_s5  ;;  %v1314_v33 = vunpack.c.l.b16 %v2496_v30  ;;  %v686_v36 = vld [vmem:[%s2821_s28 + $0xa9] sm:$0x7f] }
  0xba   : > { %v555_v38 = vpop.permute.xlu1 %554  ;;  %v553_v39 = vpop.permute.xlu0 %552 }
  0xbb   : > { %642 = vst.msk [vmem:[#allocation2 + $0x68] sm:$0xff] %vm632_vm6, %v555_v38  ;;  %v1063_v41 = vld [vmem:[#allocation2 + $0x48] sm:$0xff]  ;;  %v732_v43 = vpop.permute.xlu2 %731  ;;  %v1316_v35 = vpack.c.b16 %v1314_v33, %v1314_v33 }
  0xbc   : > { %641 = vst.msk [vmem:[#allocation2 + $0x60] sm:$0xff] %vm632_vm6, %v553_v39  ;;  %v3116_v42 = vpack.c.bf16 %v1063_v41, %v1062_v40  ;;  %v879_v39 = vld [vmem:[%s2821_s28 + $0xa2] sm:$0xff]  ;;  %v884_v33 = vld [vmem:[%s2821_s28 + $0xca] sm:$0x3f] }
  0xbd   : > { %835 = vst.msk [vmem:[#allocation2 + $0x60] sm:$0xff] %vm825_vm8, %v746_v14  ;;  %v1343_v38 = vsel %vm1143_vm3, %v1316_v35, 0  ;;  %v3231_v40 = vld [vmem:[%s2821_s28 + $0xc0] sm:$0xff] }
  0xbe   : > { %2490 = vmatmul.msk.bf16.vlgmr.msra.gmra.mxu3 %vm170_vm0, %v3116_v42  ;;  %1351 = vmatpush.bf16.msrb.mxu2 %v1343_v38  ;;  %270 = vst.msk [vmem:[#allocation2 + $0xe2] sm:$0xff] %vm244_vm1, %v3231_v40  ;;  %v883_v35 = vld [vmem:[%s2821_s28 + $0xc2] sm:$0xff]  ;;  %v230_v38 = vld [vmem:[%s2821_s28 + $0x98] sm:$0x3f] }
  0xbf   : > { %265 = vst.msk [vmem:[#allocation2 + $0xba] sm:$0x3f] %vm246_vm4, %v230_v38  ;;  %v234_v38 = vld [vmem:[%s2821_s28 + $0xb8] sm:$0x3f] }
  0xc0   : > { %374 = vrot.lane.b32.xlu1 %v3068_v9, %s2743_s30  ;;  %953 = vrot.lane.b32.xlu0 %v874_v44, %s2745_s5  ;;  %269 = vst.msk [vmem:[#allocation2 + $0xda] sm:$0x3f] %vm246_vm4, %v234_v38 }
  0xc1   : > { %376 = vrot.lane.b32.xlu2 %v295_v45, %s2743_s30 }
  0xc2   : > { %v940_v46 = vpop.permute.xlu1 %939  ;;  %v748_v47 = vpop.permute.xlu0 %747 }
  0xc3   : > { %1029 = vst.msk [vmem:[#allocation2 + $0x60] sm:$0xff] %vm1019_vm10, %v940_v46  ;;  %v363_v48 = vpop.permute.xlu2 %362 }
  0xc4   : > { %836 = vst.msk [vmem:[#allocation2 + $0x68] sm:$0x7f] %vm827_vm7, %v748_v47 }
  0xc5   : > { %1030 = vst.msk [vmem:[#allocation2 + $0x68] sm:$0x3f] %vm1021_vm9, %v942_v25  ;;  %v224_v25 = vld [vmem:[%s2821_s28 + $0x68] sm:$0x3f] }
  0xc6   : > { %450 = vst.msk [vmem:[#allocation2 + $0x71] sm:$0xff] %vm438_vm2, %v363_v48  ;;  %v2526_v48 = vld [vmem:[%s3892_s1 + $0x38] sm:$0x3] }
  0xc7   : > { %259 = vst.msk [vmem:[#allocation2 + $0x8a] sm:$0x3f] %vm246_vm4, %v224_v25  ;;  %v497_v25 = vld [vmem:[%s2821_s28 + $0xc8] sm:$0xff] }
  0xc8   : > { %570 = vrot.lane.b32.xlu1 %v489_v50, %s2742_s29  ;;  %568 = vrot.lane.b32.xlu0 %v3068_v9, %s2742_s29  ;;  %v684_v9 = vld [vmem:[%s2821_s28 + $0x99] sm:$0x7f]  ;;  %v1574_v50 = vunpack.c.l.b16 %v2526_v48 }
  0xc9   : > { %761 = vrot.lane.b32.xlu2 %v681_v51, %s2744_s4  ;;  %v301_v51 = vld [vmem:[%s2821_s28 + $0xb8] sm:$0x7f] }
  0xca   : > { %v345_v52 = vpop.permute.xlu1 %344  ;;  %v343_v53 = vpop.permute.xlu0 %342  ;;  %v1092_v54 = vld [vmem:[#allocation2 + $0x60] sm:$0xff]  ;;  %v692_v48 = vld [vmem:[%s2821_s28 + $0xd9] sm:$0x7f] }
  0xcb   : > { %441 = vst.msk [vmem:[#allocation2 + $0x29] sm:$0x7f] %vm440_vm5, %v345_v52  ;;  %v559_v56 = vpop.permute.xlu2 %558  ;;  %v1576_v52 = vpack.c.b16 %v1574_v50, %v1574_v50  ;;  %v2568_v50 = vld [vmem:[%s3892_s1 + $0x20] sm:$0x3] }
  0xcc   : > { %439 = vst.msk [vmem:[#allocation2 + $0x21] sm:$0xff] %vm438_vm2, %v343_v53  ;;  %v1093_v55 = vld [vmem:[#allocation2 + $0x68] sm:$0xff]  ;;  %v2541_v53 = vld [vmem:[%s3892_s1 + $0x14] sm:$0x3] }
  0xcd   : > { %633 = vst.msk [vmem:[#allocation2 + $0x20] sm:$0xff] %vm632_vm6, %v537_v31  ;;  %v3142_v57 = vpack.c.bf16 %v1093_v55, %v1092_v54  ;;  %v1603_v54 = vsel %vm1143_vm3, %v1576_v52, 0  ;;  %v1782_v55 = vunpack.c.l.b16 %v2541_v53  ;;  %v1980_v52 = vunpack.c.l.b16 %v2568_v50  ;;  %v885_v53 = vld [vmem:[%s2821_s28 + $0xd2] sm:$0xff] }
  0xce   : > { %2491 = vmatmul.msk.bf16.gmra.mxu3 %vm170_vm0, %v3085_v23  ;;  %1611 = vmatpush.bf16.msrb.mxu0 %v1603_v54 }
  0xcf   : > { %2479 = vmatmul.msk.bf16.gmra.mxu2 %vm170_vm0, %v3142_v57 }
  0xd0   : > { %955 = vrot.lane.b32.xlu1 %v875_v58, %s2745_s5  ;;  %763 = vrot.lane.b32.xlu0 %v682_v59, %s2744_s4  ;;  %v1784_v59 = vpack.c.b16 %v1782_v55, %v1782_v55  ;;  %v1982_v55 = vpack.c.b16 %v1980_v52, %v1980_v52 }
  0xd1   : > { %957 = vrot.lane.b32.xlu2 %v876_v61, %s2745_s5  ;;  %v226_v61 = vld [vmem:[%s2821_s28 + $0x78] sm:$0x3f] }
  0xd2   : > { %v730_v62 = vpop.permute.xlu1 %729  ;;  %v539_v63 = vpop.permute.xlu0 %538  ;;  %261 = vst.msk [vmem:[#allocation2 + $0x9a] sm:$0x3f] %vm246_vm4, %v226_v61 }
  0xd3   : > { %826 = vst.msk [vmem:[#allocation2 + $0x20] sm:$0xff] %vm825_vm8, %v730_v62  ;;  %v944_v0 = vpop.permute.xlu2 %943  ;;  %v495_v62 = vld [vmem:[%s2821_s28 + $0xb8] sm:$0xff] }
  0xd4   : > { %634 = vst.msk [vmem:[#allocation2 + $0x28] sm:$0xff] %vm632_vm6, %v539_v63  ;;  %v1811_v63 = vsel %vm1143_vm3, %v1784_v59, 0 }
  0xd5   : > { %828 = vst.msk [vmem:[#allocation2 + $0x28] sm:$0x7f] %vm827_vm7, %v732_v43  ;;  %1819 = vmatpush.bf16.msrb.mxu1 %v1811_v63 }
  0xd8   : > { %380 = vrot.lane.b32.xlu1 %v297_v2, %s2743_s30  ;;  %378 = vrot.lane.b32.xlu0 %v3107_v37, %s2743_s30 }
  0xd9   : > { %572 = vrot.lane.b32.xlu2 %v3107_v37, %s2742_s29  ;;  %v685_v37 = vld [vmem:[%s2821_s28 + $0xa1] sm:$0xff]  ;;  %1820 = vmatpush.bf16.msrb.mxu1 %v2623_v19 }
  0xda   : > { %v926_v3 = vpop.permute.xlu1 %925  ;;  %v924_v4 = vpop.permute.xlu0 %923  ;;  %v693_v19 = vld [vmem:[%s2821_s28 + $0xe1] sm:$0xff] }
  0xdb   : > { %1022 = vst.msk [vmem:[#allocation2 + $0x28] sm:$0x3f] %vm1021_vm9, %v926_v3  ;;  %v349_v5 = vpop.permute.xlu2 %348 }
  0xdc   : > { %1020 = vst.msk [vmem:[#allocation2 + $0x20] sm:$0xff] %vm1019_vm10, %v924_v4 }
  0xdd   : > { %443 = vst.msk [vmem:[#allocation2 + $0x39] sm:$0x7f] %vm440_vm5, %v349_v5 }
  0xde   : > { %2492 = vmatmul.msk.bf16.gmra.mxu3 %vm170_vm0, %v3142_v57 }
  0xe0   : > { %765 = vrot.lane.b32.xlu1 %v683_v6, %s2744_s4  ;;  %574 = vrot.lane.b32.xlu0 %v491_v7, %s2742_s29  ;;  %v2621_v6 = vld [vmem:[%s3892_s1 + $0x30] sm:$0xff] }
  0xe1   : > { %767 = vrot.lane.b32.xlu2 %v684_v9, %s2744_s4  ;;  %v688_v9 = vld [vmem:[%s2821_s28 + $0xb9] sm:$0x7f]  ;;  %1612 = vmatpush.bf16.msrb.mxu0 %v2621_v6 }
  0xe2   : > { %v557_v10 = vpop.permute.xlu1 %556  ;;  %v365_v11 = vpop.permute.xlu0 %364  ;;  %v1085_v12 = vld [vmem:[#allocation2 + $0x28] sm:$0xff]  ;;  %v2598_v6 = vld [vmem:[%s3892_s1 + $0x38] sm:$0x3] }
  0xe3   : > { %643 = vst.msk [vmem:[#allocation2 + $0x70] sm:$0xff] %vm632_vm6, %v557_v10  ;;  %v1084_v13 = vld [vmem:[#allocation2 + $0x20] sm:$0xff]  ;;  %v734_v15 = vpop.permute.xlu2 %733  ;;  %v882_v10 = vld [vmem:[%s2821_s28 + $0xba] sm:$0x3f] }
  0xe4   : > { %451 = vst.msk [vmem:[#allocation2 + $0x79] sm:$0x7f] %vm440_vm5, %v365_v11  ;;  %v3188_v14 = vpack.c.bf16 %v1085_v12, %v1084_v13  ;;  %v498_v11 = vld [vmem:[%s2821_s28 + $0xd0] sm:$0xff]  ;;  %v2619_v12 = vld [vmem:[%s3892_s1 + $0x18] sm:$0xff] }
  0xe5   : > { %644 = vst.msk [vmem:[#allocation2 + $0x78] sm:$0xff] %vm632_vm6, %v559_v56  ;;  %1352 = vmatpush.bf16.msrb.mxu2 %v2619_v12 }
  0xe6   : > { %2475 = vmatmul.msk.bf16.gmra.mxu0 %vm170_vm0, %v3188_v14  ;;  %2488 = vmatmul.msk.bf16.gmra.mxu1 %vm170_vm0, %v3188_v14  ;;  %272 = vst.msk [vmem:[#allocation2 + $0xf2] sm:$0xff] %vm244_vm1, %v498_v11 }
  0xe8   : > { %961 = vrot.lane.b32.xlu1 %v878_v16, %s2745_s5  ;;  %959 = vrot.lane.b32.xlu0 %v877_v17, %s2745_s5  ;;  %v228_v17 = vld [vmem:[%s2821_s28 + $0x88] sm:$0x3f] }
  0xe9   : > { %382 = vrot.lane.b32.xlu2 %v3147_v60, %s2743_s30  ;;  %263 = vst.msk [vmem:[#allocation2 + $0xaa] sm:$0x3f] %vm246_vm4, %v228_v17  ;;  %v501_v17 = vld [vmem:[%s2821_s28 + $0xe8] sm:$0xff] }
  0xea   : > { %v752_v21 = vpop.permute.xlu1 %751  ;;  %v750_v22 = vpop.permute.xlu0 %749 }
  0xeb   : > { %838 = vst.msk [vmem:[#allocation2 + $0x78] sm:$0x7f] %vm827_vm7, %v752_v21  ;;  %v930_v26 = vpop.permute.xlu2 %929 }
  0xec   : > { %837 = vst.msk [vmem:[#allocation2 + $0x70] sm:$0xff] %vm825_vm8, %v750_v22 }
  0xed   : > { %1031 = vst.msk [vmem:[#allocation2 + $0x70] sm:$0xff] %vm1019_vm10, %v944_v0  ;;  %v687_v0 = vld [vmem:[%s2821_s28 + $0xb1] sm:$0xff] }
  0xf0   : > { %576 = vrot.lane.b32.xlu1 %v3147_v60, %s2742_s29  ;;  %384 = vrot.lane.b32.xlu0 %v299_v28, %s2743_s30 }
  0xf1   : > { %578 = vrot.lane.b32.xlu2 %v493_v29, %s2742_s29 }
  0xf2   : > { %v347_v31 = vpop.permute.xlu1 %346  ;;  %v946_v32 = vpop.permute.xlu0 %945 }
  0xf3   : > { %442 = vst.msk [vmem:[#allocation2 + $0x31] sm:$0xff] %vm438_vm2, %v347_v31  ;;  %v561_v34 = vpop.permute.xlu2 %560 }
  0xf4   : > { %1032 = vst.msk [vmem:[#allocation2 + $0x78] sm:$0x3f] %vm1021_vm9, %v946_v32  ;;  %v1094_v44 = vld [vmem:[#allocation2 + $0x70] sm:$0xff] }
  0xf8   : > { %771 = vrot.lane.b32.xlu1 %v686_v36, %s2744_s4  ;;  %769 = vrot.lane.b32.xlu0 %v685_v37, %s2744_s4  ;;  %v3467_v52 = vpop.f32.mrf.mxu0 }
  0xf9   : > { %963 = vrot.lane.b32.xlu2 %v879_v39, %s2745_s5 }
  0xfa   : > { %v543_v41 = vpop.permute.xlu1 %542  ;;  %v541_v43 = vpop.permute.xlu0 %540 }
  0xfb   : > { %636 = vst.msk [vmem:[#allocation2 + $0x38] sm:$0xff] %vm632_vm6, %v543_v41  ;;  %v1095_v45 = vld [vmem:[#allocation2 + $0x78] sm:$0xff]  ;;  %v3240_v47 = vpop.permute.xlu2 %755 }
  0xfc   : > { %635 = vst.msk [vmem:[#allocation2 + $0x30] sm:$0xff] %vm632_vm6, %v541_v43  ;;  %v3238_v46 = vpack.c.bf16 %v1095_v45, %v1094_v44  ;;  %v499_v41 = vld [vmem:[%s2821_s28 + $0xd8] sm:$0xff] }
  0xfd   : > { %829 = vst.msk [vmem:[#allocation2 + $0x30] sm:$0xff] %vm825_vm8, %v734_v15 }
  0xfe   : > { %2480 = vmatmul.msk.bf16.gmra.mxu2 %vm170_vm0, %v3238_v46  ;;  %2493 = vmatmul.msk.bf16.gmra.mxu3 %vm170_vm0, %v3238_v46 }
 0x100   : > { %386 = vrot.lane.b32.xlu1 %v3178_v8, %s2743_s30  ;;  %965 = vrot.lane.b32.xlu0 %v880_v49, %s2745_s5 }
 0x101   : > { %388 = vrot.lane.b32.xlu2 %v301_v51, %s2743_s30  ;;  %v691_v51 = vld [vmem:[%s2821_s28 + $0xd1] sm:$0xff] }
 0x102   : > { %v928_v56 = vpop.permute.xlu1 %927  ;;  %v736_v58 = vpop.permute.xlu0 %735 }
 0x103   : > { %1023 = vst.msk [vmem:[#allocation2 + $0x30] sm:$0xff] %vm1019_vm10, %v928_v56  ;;  %v371_v60 = vpop.permute.xlu2 %370 }
 0x104   : > { %830 = vst.msk [vmem:[#allocation2 + $0x38] sm:$0x7f] %vm827_vm7, %v736_v58 }
 0x105   : > { %1024 = vst.msk [vmem:[#allocation2 + $0x38] sm:$0x3f] %vm1021_vm9, %v930_v26  ;;  %v690_v26 = vld [vmem:[%s2821_s28 + $0xc9] sm:$0x7f] }
 0x106   : > { %454 = vst.msk [vmem:[#allocation2 + $0x91] sm:$0xff] %vm438_vm2, %v371_v60 }
 0x108   : > { %582 = vrot.lane.b32.xlu1 %v495_v62, %s2742_s29  ;;  %580 = vrot.lane.b32.xlu0 %v3178_v8, %s2742_s29  ;;  %v881_v8 = vld [vmem:[%s2821_s28 + $0xb2] sm:$0xff] }
 0x109   : > { %773 = vrot.lane.b32.xlu2 %v687_v0, %s2744_s4  ;;  %v2583_v0 = vld [vmem:[%s3892_s1 + $0x2c] sm:$0x3] }
 0x10a   : > { %v369_v1 = vpop.permute.xlu1 %368  ;;  %v367_v2 = vpop.permute.xlu0 %366  ;;  %v1086_v3 = vld [vmem:[#allocation2 + $0x30] sm:$0xff] }
 0x10b   : > { %453 = vst.msk [vmem:[#allocation2 + $0x89] sm:$0x7f] %vm440_vm5, %v369_v1  ;;  %v567_v5 = vpop.permute.xlu2 %566  ;;  %v2109_v1 = vunpack.c.l.b16 %v2583_v0 }
 0x10c   : > { %452 = vst.msk [vmem:[#allocation2 + $0x81] sm:$0xff] %vm438_vm2, %v367_v2  ;;  %v1087_v4 = vld [vmem:[#allocation2 + $0x38] sm:$0xff] }
 0x10d   : > { %645 = vst.msk [vmem:[#allocation2 + $0x80] sm:$0xff] %vm632_vm6, %v561_v34  ;;  %v3279_v7 = vpack.c.bf16 %v1087_v4, %v1086_v3  ;;  %v3333_v34 = vld [vmem:[%s2821_s28 + $0xe0] sm:$0xff]  ;;  %v886_v2 = vld [vmem:[%s2821_s28 + $0xda] sm:$0x3f]  ;;  %v307_v4 = vld [vmem:[%s2821_s28 + $0xe8] sm:$0x7f] }
 0x10e   : > { %274 = vst.msk [vmem:[#allocation2 + $0x102] sm:$0xff] %vm244_vm1, %v3333_v34 }
 0x10f   : > { %2476 = vmatmul.msk.bf16.gmra.mxu0 %vm170_vm0, %v3279_v7  ;;  %2489 = vmatmul.msk.bf16.gmra.mxu1 %vm170_vm0, %v3279_v7 }
 0x110   : > { %2516 = vmatmul.msk.bf16.vlgmr.msrb.gmra.mxu3 %vm170_vm0, %v3279_v7  ;;  %967 = vrot.lane.b32.xlu1 %v881_v8, %s2745_s5 }
 0x111   : > { %775 = vrot.lane.b32.xlu0 %v688_v9, %s2744_s4  ;;  %969 = vrot.lane.b32.xlu2 %v882_v10, %s2745_s5 }
 0x112   : > { %v754_v13 = vpop.permute.xlu1 %753  ;;  %v563_v15 = vpop.permute.xlu0 %562 }
 0x113   : > { %839 = vst.msk [vmem:[#allocation2 + $0x80] sm:$0xff] %vm825_vm8, %v754_v13  ;;  %v952_v16 = vpop.permute.xlu2 %951 }
 0x114   : > { %646 = vst.msk [vmem:[#allocation2 + $0x88] sm:$0xff] %vm632_vm6, %v563_v15 }
 0x115   : > { %840 = vst.msk [vmem:[#allocation2 + $0x88] sm:$0x7f] %vm827_vm7, %v3240_v47  ;;  %v1748_v47 = vld [vmem:[%s3892_s1 + $0x8] sm:$0x3] }
 0x116   : > { %v1867_v49 = vunpack.c.l.b16 %v1748_v47  ;;  %v1288_v47 = vld [vmem:[#allocation2 + $0x58] sm:$0xff] }
 0x118   : > { %392 = vrot.lane.b32.xlu1 %v303_v18, %s2743_s30  ;;  %v1869_v54 = vpack.c.b16 %v1867_v49, %v1867_v49 }
 0x119   : > { %390 = vrot.lane.b32.xlu0 %v3231_v40, %s2743_s30  ;;  %584 = vrot.lane.b32.xlu2 %v3231_v40, %s2742_s29  ;;  %v305_v40 = vld [vmem:[%s2821_s28 + $0xd8] sm:$0x7f] }
 0x11a   : > { %v950_v20 = vpop.permute.xlu1 %949  ;;  %v948_v21 = vpop.permute.xlu0 %947  ;;  %v1896_v56 = vsel %vm1143_vm3, %v1869_v54, 0 }
 0x11b   : > { %1034 = vst.msk [vmem:[#allocation2 + $0x88] sm:$0x3f] %vm1021_vm9, %v950_v20  ;;  %v377_v22 = vpop.permute.xlu2 %376  ;;  %1904 = vmatpush.bf16.msra.mxu2 %v1896_v56  ;;  %v236_v56 = vld [vmem:[%s2821_s28 + $0xc8] sm:$0x3f] }
 0x11c   : > { %1033 = vst.msk [vmem:[#allocation2 + $0x80] sm:$0xff] %vm1019_vm10, %v948_v21 }
 0x11d   : > { %457 = vst.msk [vmem:[#allocation2 + $0xa9] sm:$0x7f] %vm440_vm5, %v377_v22 }
 0x11e   : > { %271 = vst.msk [vmem:[#allocation2 + $0xea] sm:$0x3f] %vm246_vm4, %v236_v56 }
 0x11f   : > { %2477 = vmatmul.msk.bf16.gmra.mxu0 %vm170_vm0, %v3116_v42 }
 0x120   : > { %2517 = vmatmul.msk.bf16.gmra.mxu3 %vm170_vm0, %v3116_v42  ;;  %777 = vrot.lane.b32.xlu1 %v689_v24, %s2744_s4 }
 0x121   : > { %586 = vrot.lane.b32.xlu0 %v497_v25, %s2742_s29  ;;  %779 = vrot.lane.b32.xlu2 %v690_v26, %s2744_s4 }
 0x122   : > { %v565_v27 = vpop.permute.xlu1 %564  ;;  %v373_v28 = vpop.permute.xlu0 %372  ;;  %v1097_v29 = vld [vmem:[#allocation2 + $0x88] sm:$0xff] }
 0x123   : > { %647 = vst.msk [vmem:[#allocation2 + $0x90] sm:$0xff] %vm632_vm6, %v565_v27  ;;  %v1096_v30 = vld [vmem:[#allocation2 + $0x80] sm:$0xff]  ;;  %v762_v32 = vpop.permute.xlu2 %761 }
 0x124   : > { %455 = vst.msk [vmem:[#allocation2 + $0x99] sm:$0x7f] %vm440_vm5, %v373_v28  ;;  %v3328_v31 = vpack.c.bf16 %v1097_v29, %v1096_v30  ;;  %v887_v28 = vld [vmem:[%s2821_s28 + $0xe2] sm:$0xff]  ;;  %v888_v30 = vld [vmem:[%s2821_s28 + $0xea] sm:$0x3f] }
 0x125   : > { %648 = vst.msk [vmem:[#allocation2 + $0x98] sm:$0xff] %vm632_vm6, %v567_v5  ;;  %v2111_v5 = vpack.c.b16 %v2109_v1, %v2109_v1  ;;  %v694_v29 = vld [vmem:[%s2821_s28 + $0xe9] sm:$0x7f] }
 0x126   : > { %2481 = vmatmul.msk.bf16.gmra.mxu2 %vm170_vm0, %v3328_v31 }
 0x127   : > { %v2138_v9 = vsel %vm1143_vm3, %v2111_v5, 0  ;;  %v503_v5 = vld [vmem:[%s2821_s28 + $0xf8] sm:$0xff] }
 0x128   : > { %973 = vrot.lane.b32.xlu1 %v884_v33, %s2745_s5  ;;  %2146 = vmatpush.bf16.msra.mxu0 %v2138_v9 }
 0x129   : > { %971 = vrot.lane.b32.xlu0 %v883_v35, %s2745_s5  ;;  %394 = vrot.lane.b32.xlu2 %v498_v11, %s2743_s30 }
 0x12a   : > { %v760_v36 = vpop.permute.xlu1 %759  ;;  %v758_v37 = vpop.permute.xlu0 %757 }
 0x12b   : > { %842 = vst.msk [vmem:[#allocation2 + $0x98] sm:$0x7f] %vm827_vm7, %v760_v36  ;;  %v3346_v39 = vpop.permute.xlu2 %957 }
 0x12c   : > { %841 = vst.msk [vmem:[#allocation2 + $0x90] sm:$0xff] %vm825_vm8, %v758_v37 }
 0x12d   : > { %1035 = vst.msk [vmem:[#allocation2 + $0x90] sm:$0xff] %vm1019_vm10, %v952_v16  ;;  %v232_v16 = vld [vmem:[%s2821_s28 + $0xa8] sm:$0x3f] }
 0x12e   : > { %267 = vst.msk [vmem:[#allocation2 + $0xca] sm:$0x3f] %vm246_vm4, %v232_v16  ;;  %v2625_v16 = vld [vmem:[%s3892_s1 + $0x24] sm:$0xff] }
 0x12f   : > { %2531 = vmatmul.msk.bf16.vlgmr.msrb.gmra.mxu0 %vm170_vm0, %v3116_v42 }
 0x130   : > { %2518 = vmatmul.msk.bf16.gmra.mxu3 %vm170_vm0, %v3085_v23  ;;  %588 = vrot.lane.b32.xlu1 %v498_v11, %s2742_s29  ;;  %v1176_v3 = vpop.f32.mrf.mxu2 }
 0x131   : > { %396 = vrot.lane.b32.xlu0 %v305_v40, %s2743_s30  ;;  %590 = vrot.lane.b32.xlu2 %v499_v41, %s2742_s29 }
 0x132   : > { %v375_v43 = vpop.permute.xlu1 %374  ;;  %v954_v44 = vpop.permute.xlu0 %953  ;;  %2147 = vmatpush.bf16.msra.mxu0 %v2625_v16 }
 0x133   : > { %456 = vst.msk [vmem:[#allocation2 + $0xa1] sm:$0xff] %vm438_vm2, %v375_v43  ;;  %v3361_v45 = vpop.permute.xlu2 %572  ;;  %v1287_v43 = vld [vmem:[#allocation2 + $0x50] sm:$0xff] }
 0x134   : > { %1036 = vst.msk [vmem:[#allocation2 + $0x98] sm:$0x3f] %vm1021_vm9, %v954_v44  ;;  %v1750_v60 = vld [vmem:[#allocation2 + $0x90] sm:$0xff]  ;;  %v1300_v49 = vpack.c.bf16 %v1288_v47, %v1287_v43  ;;  %v240_v47 = vld [vmem:[%s2821_s28 + $0xe8] sm:$0x3f] }
 0x135   : > { %275 = vst.msk [vmem:[#allocation2 + $0x10a] sm:$0x3f] %vm246_vm4, %v240_v47 }
 0x136   : > { %2501 = vmatmul.msk.bf16.vlgmr.msrb.gmra.mxu2 %vm170_vm0, %v3188_v14  ;;  %v2009_v14 = vsel %vm1143_vm3, %v1982_v55, 0 }
 0x137   : > { %2017 = vmatpush.bf16.msra.mxu3 %v2009_v14  ;;  %v3484_v14 = vpop.f32.mrf.mxu0 }
 0x138   : > { %783 = vrot.lane.b32.xlu1 %v692_v48, %s2744_s4  ;;  %v3420_v20 = vpop.f32.mrf.mxu2 }
 0x139   : > { %781 = vrot.lane.b32.xlu0 %v691_v51, %s2744_s4  ;;  %975 = vrot.lane.b32.xlu2 %v885_v53, %s2745_s5 }
 0x13a   : > { %v571_v58 = vpop.permute.xlu1 %570  ;;  %v569_v59 = vpop.permute.xlu0 %568 }
 0x13b   : > { %650 = vst.msk [vmem:[#allocation2 + $0xa8] sm:$0xff] %vm632_vm6, %v571_v58  ;;  %v1751_v61 = vld [vmem:[#allocation2 + $0x98] sm:$0xff]  ;;  %v3383_v63 = vpop.permute.xlu2 %767 }
 0x13c   : > { %649 = vst.msk [vmem:[#allocation2 + $0xa0] sm:$0xff] %vm632_vm6, %v569_v59  ;;  %v3381_v62 = vpack.c.bf16 %v1751_v61, %v1750_v60  ;;  %v2624_v59 = vld [vmem:[%s3892_s1 + $0x18] sm:$0xff]  ;;  %v308_v61 = vld [vmem:[%s2821_s28 + $0xf0] sm:$0xff] }
 0x13d   : > { %843 = vst.msk [vmem:[#allocation2 + $0xa0] sm:$0xff] %vm825_vm8, %v762_v32  ;;  %2018 = vmatpush.bf16.msra.mxu3 %v2624_v59  ;;  %v309_v60 = vld [vmem:[%s2821_s28 + $0xf8] sm:$0x7f] }
 0x13e   : > { %2546 = vmatmul.msk.bf16.vlgmr.msrb.gmra.mxu1 %vm170_vm0, %v3381_v62  ;;  %276 = vst.msk [vmem:[#allocation2 + $0x112] sm:$0xff] %vm244_vm1, %v308_v61 }
 0x13f   : > { %2532 = vmatmul.msk.bf16.gmra.mxu0 %vm170_vm0, %v3085_v23  ;;  %v2238_v23 = vunpack.c.l.b16 %v2598_v6 }
 0x140   : > { %2519 = vmatmul.msk.bf16.gmra.mxu3 %vm170_vm0, %v3142_v57  ;;  %398 = vrot.lane.b32.xlu1 %v3333_v34, %s2743_s30 }
 0x141   : > { %977 = vrot.lane.b32.xlu0 %v886_v2, %s2745_s5  ;;  %v1261_v8 = vpop.f32.mrf.mxu3  ;;  %400 = vrot.lane.b32.xlu2 %v307_v4, %s2743_s30  ;;  %v2240_v13 = vpack.c.b16 %v2238_v23, %v2238_v23  ;;  %v695_v4 = vld [vmem:[%s2821_s28 + $0xf1] sm:$0xff] }
 0x142   : > { %v3404_v10 = vadd.f32 %v1261_v8, %v1176_v3  ;;  %v956_v11 = vpop.permute.xlu1 %955  ;;  %v764_v12 = vpop.permute.xlu0 %763  ;;  %v2622_v3 = vld [vmem:[%s3892_s1] sm:$0xff] }
 0x143   : > { %1037 = vst.msk [vmem:[#allocation2 + $0xa0] sm:$0xff] %vm1019_vm10, %v956_v11  ;;  %v383_v15 = vpop.permute.xlu2 %382  ;;  %v2267_v18 = vsel %vm1143_vm3, %v2240_v13, 0  ;;  %1905 = vmatpush.bf16.msra.mxu2 %v2622_v3 }
 0x144   : > { %844 = vst.msk [vmem:[#allocation2 + $0xa8] sm:$0x7f] %vm827_vm7, %v764_v12  ;;  %2275 = vmatpush.bf16.msra.mxu1 %v2267_v18  ;;  %v2626_v18 = vld [vmem:[%s3892_s1 + $0x30] sm:$0xff] }
 0x145   : > { %1038 = vst.msk [vmem:[#allocation2 + $0xa8] sm:$0x3f] %vm1021_vm9, %v3346_v39 }
 0x146   : > { %2502 = vmatmul.msk.bf16.gmra.mxu2 %vm170_vm0, %v3279_v7  ;;  %460 = vst.msk [vmem:[#allocation2 + $0xc1] sm:$0xff] %vm438_vm2, %v383_v15  ;;  %v3513_v15 = vpop.f32.mrf.mxu1 }
 0x148   : > { %594 = vrot.lane.b32.xlu1 %v501_v17, %s2742_s29  ;;  %2276 = vmatpush.bf16.msra.mxu1 %v2626_v18 }
 0x149   : > { %592 = vrot.lane.b32.xlu0 %v3333_v34, %s2742_s29  ;;  %v3424_v21 = vpop.f32.mrf.mxu3  ;;  %785 = vrot.lane.b32.xlu2 %v693_v19, %s2744_s4  ;;  %v890_v19 = vld [vmem:[%s2821_s28 + $0xfa] sm:$0x3f] }
 0x14a   : > { %v381_v22 = vpop.permute.xlu1 %380  ;;  %v379_v7 = vpop.permute.xlu0 %378  ;;  %v1752_v24 = vld [vmem:[#allocation2 + $0xa0] sm:$0xff] }
 0x14b   : > { %459 = vst.msk [vmem:[#allocation2 + $0xb9] sm:$0x7f] %vm440_vm5, %v381_v22  ;;  %v579_v26 = vpop.permute.xlu2 %578  ;;  %v889_v22 = vld [vmem:[%s2821_s28 + $0xf2] sm:$0xff] }
 0x14c   : > { %458 = vst.msk [vmem:[#allocation2 + $0xb1] sm:$0xff] %vm438_vm2, %v379_v7  ;;  %v1753_v25 = vld [vmem:[#allocation2 + $0xa8] sm:$0xff] }
 0x14d   : > { %651 = vst.msk [vmem:[#allocation2 + $0xb0] sm:$0xff] %vm632_vm6, %v3361_v45  ;;  %v3431_v27 = vpack.c.bf16 %v1753_v25, %v1752_v24 }
 0x14f   : > { %2533 = vmatmul.msk.bf16.gmra.mxu0 %vm170_vm0, %v3142_v57  ;;  %2547 = vmatmul.msk.bf16.gmra.mxu1 %vm170_vm0, %v3431_v27 }
 0x150   : > { %2520 = vmatmul.msk.bf16.gmra.mxu3 %vm170_vm0, %v3238_v46  ;;  %979 = vrot.lane.b32.xlu1 %v887_v28, %s2745_s5 }
 0x151   : > { %787 = vrot.lane.b32.xlu0 %v694_v29, %s2744_s4  ;;  %v1266_v32 = vpop.f32.mrf.mxu3  ;;  %981 = vrot.lane.b32.xlu2 %v888_v30, %s2745_s5  ;;  %v238_v30 = vld [vmem:[%s2821_s28 + $0xd8] sm:$0x3f] }
 0x152   : > { %v1181_v33 = vpop.f32.mrf.mxu2  ;;  %v766_v34 = vpop.permute.xlu1 %765  ;;  %273 = vst.msk [vmem:[#allocation2 + $0xfa] sm:$0x3f] %vm246_vm4, %v238_v30  ;;  %v1242_v30 = vadd.f32 %v3513_v15, %v3467_v52 }
 0x153   : > { %v3445_v35 = vadd.f32 %v1266_v32, %v1181_v33  ;;  %845 = vst.msk [vmem:[#allocation2 + $0xb0] sm:$0xff] %vm825_vm8, %v766_v34  ;;  %v575_v36 = vpop.permute.xlu0 %574  ;;  %v964_v37 = vpop.permute.xlu2 %963 }
 0x154   : > { %652 = vst.msk [vmem:[#allocation2 + $0xb8] sm:$0xff] %vm632_vm6, %v575_v36  ;;  %v3545_v33 = vpop.f32.mrf.mxu1 }
 0x155   : > { %846 = vst.msk [vmem:[#allocation2 + $0xb8] sm:$0x7f] %vm827_vm7, %v3383_v63 }
 0x156   : > { %2503 = vmatmul.msk.bf16.gmra.mxu2 %vm170_vm0, %v3116_v42 }
 0x158   : > { %404 = vrot.lane.b32.xlu1 %v309_v60, %s2743_s30 }
 0x159   : > { %v3472_v53 = vpop.f32.mrf.mxu3  ;;  %402 = vrot.lane.b32.xlu0 %v308_v61, %s2743_s30  ;;  %596 = vrot.lane.b32.xlu2 %v308_v61, %s2742_s29 }
 0x15a   : > { %v962_v39 = vpop.permute.xlu1 %961  ;;  %v3503_v6 = vpop.f32.mrf.mxu2 }
 0x15b   : > { %1040 = vst.msk [vmem:[#allocation2 + $0xb8] sm:$0x3f] %vm1021_vm9, %v962_v39  ;;  %v960_v40 = vpop.permute.xlu0 %959  ;;  %v389_v41 = vpop.permute.xlu2 %388 }
 0x15c   : > { %1039 = vst.msk [vmem:[#allocation2 + $0xb0] sm:$0xff] %vm1019_vm10, %v960_v40  ;;  %v3561_v43 = vpop.f32.mrf.mxu1 }
 0x15d   : > { %463 = vst.msk [vmem:[#allocation2 + $0xd9] sm:$0x7f] %vm440_vm5, %v389_v41 }
 0x15f   : > { %2534 = vmatmul.msk.bf16.gmra.mxu0 %vm170_vm0, %v3238_v46 }
 0x160   : > { %2521 = vmatmul.msk.bf16.gmra.mxu3 %vm170_vm0, %v3328_v31  ;;  %789 = vrot.lane.b32.xlu1 %v695_v4, %s2744_s4 }
 0x161   : > { %v1271_v1 = vpop.f32.mrf.mxu3  ;;  %598 = vrot.lane.b32.xlu0 %v503_v5, %s2742_s29 }
 0x162   : > { %v577_v44 = vpop.permute.xlu1 %576  ;;  %v1755_v42 = vld [vmem:[#allocation2 + $0xb8] sm:$0xff] }
 0x163   : > { %653 = vst.msk [vmem:[#allocation2 + $0xc0] sm:$0xff] %vm632_vm6, %v577_v44  ;;  %v385_v45 = vpop.permute.xlu0 %384  ;;  %v1754_v48 = vld [vmem:[#allocation2 + $0xb0] sm:$0xff]  ;;  %v774_v51 = vpop.permute.xlu2 %773 }
 0x164   : > { %461 = vst.msk [vmem:[#allocation2 + $0xc9] sm:$0x7f] %vm440_vm5, %v385_v45  ;;  %v3464_v50 = vpack.c.bf16 %v1755_v42, %v1754_v48  ;;  %v3507_v8 = vpop.f32.mrf.mxu0 }
 0x165   : > { %654 = vst.msk [vmem:[#allocation2 + $0xc8] sm:$0xff] %vm632_vm6, %v579_v26 }
 0x166   : > { %2504 = vmatmul.msk.bf16.gmra.mxu2 %vm170_vm0, %v1300_v49  ;;  %2548 = vmatmul.msk.bf16.gmra.mxu1 %vm170_vm0, %v3464_v50  ;;  %v696_v49 = vld [vmem:[%s2821_s28 + $0xf9] sm:$0x7f] }
 0x167   : > { %791 = vrot.lane.b32.xlu2 %v696_v49, %s2744_s4  ;;  %s161_s4 = sand.u32 1, %s2732_s13  }
 0x168   : > { %985 = vrot.lane.b32.xlu1 %v890_v19, %s2745_s5  ;;  %s2464_s7 = sshll.u32 %s161_s4, 8 }
 0x169   : > { %v3519_v17 = vpop.f32.mrf.mxu3  ;;  %983 = vrot.lane.b32.xlu0 %v889_v22, %s2745_s5  ;;  %s3652_s8 = scalar_lea.vmem [#allocation3], %s2464_s7 }
 0x16a   : > { %v772_v54 = vpop.permute.xlu1 %771  ;;  %s2395_s17 = sshll.u32 %s3652_s8, 4  ;;  %s2396_s17 = int_to_ptr.vmem [resolvable:$true] %s2395_s17 }
 0x16b   : > { %848 = vst.msk [vmem:[#allocation2 + $0xc8] sm:$0x7f] %vm827_vm7, %v772_v54  ;;  %v770_v55 = vpop.permute.xlu0 %769  ;;  %v970_v58 = vpop.permute.xlu2 %969 }
 0x16c   : > { %847 = vst.msk [vmem:[#allocation2 + $0xc0] sm:$0xff] %vm825_vm8, %v770_v55  ;;  %v3537_v28 = vpop.f32.mrf.mxu0  ;;  %v3574_v55 = vpop.f32.mrf.mxu1 }
 0x16d   : > { %1041 = vst.msk [vmem:[#allocation2 + $0xc0] sm:$0xff] %vm1019_vm10, %v964_v37 }
 0x16f   : > { %2535 = vmatmul.msk.bf16.gmra.mxu0 %vm170_vm0, %v3328_v31 }
 0x170   : > { %2522 = vmatmul.msk.bf16.gmra.mxu3 %vm170_vm0, %v3381_v62 }
 0x172   : > { %v387_v63 = vpop.permute.xlu1 %386 }
 0x173   : > { %462 = vst.msk [vmem:[#allocation2 + $0xd1] sm:$0xff] %vm438_vm2, %v387_v63  ;;  %v966_v0 = vpop.permute.xlu0 %965  ;;  %v585_v2 = vpop.permute.xlu2 %584 }
 0x174   : > { %1042 = vst.msk [vmem:[#allocation2 + $0xc8] sm:$0x3f] %vm1021_vm9, %v966_v0  ;;  %v1756_v11 = vld [vmem:[#allocation2 + $0xc0] sm:$0xff]  ;;  %v3595_v5 = vpop.f32.mrf.mxu1 }
 0x176   : > { %2505 = vmatmul.msk.bf16.gmra.mxu2 %vm170_vm0, %v3142_v57 }
 0x17a   : > { %v583_v9 = vpop.permute.xlu1 %582 }
 0x17b   : > { %656 = vst.msk [vmem:[#allocation2 + $0xd8] sm:$0xff] %vm632_vm6, %v583_v9  ;;  %v581_v23 = vpop.permute.xlu0 %580  ;;  %v1757_v12 = vld [vmem:[#allocation2 + $0xc8] sm:$0xff]  ;;  %v780_v13 = vpop.permute.xlu2 %779 }
 0x17c   : > { %655 = vst.msk [vmem:[#allocation2 + $0xd0] sm:$0xff] %vm632_vm6, %v581_v23  ;;  %v3511_v57 = vpack.c.bf16 %v1757_v12, %v1756_v11  ;;  %v3609_v18 = vpop.f32.mrf.mxu1 }
 0x17d   : > { %849 = vst.msk [vmem:[#allocation2 + $0xd0] sm:$0xff] %vm825_vm8, %v774_v51 }
 0x17e   : > { %2549 = vmatmul.msk.bf16.gmra.mxu1 %vm170_vm0, %v3511_v57 }
 0x17f   : > { %2536 = vmatmul.msk.bf16.gmra.mxu0 %vm170_vm0, %v3381_v62 }
 0x180   : > { %2523 = vmatmul.msk.bf16.gmra.mxu3 %vm170_vm0, %v3431_v27 }
 0x181   : > { %v1186_v7 = vpop.f32.mrf.mxu2  ;;  %v1276_v32 = vpop.f32.mrf.mxu3 }
 0x182   : > { %v3534_v24 = vadd.f32 %v1271_v1, %v1186_v7  ;;  %v968_v25 = vpop.permute.xlu1 %967 }
 0x183   : > { %1043 = vst.msk [vmem:[#allocation2 + $0xd0] sm:$0xff] %vm1019_vm10, %v968_v25  ;;  %v776_v26 = vpop.permute.xlu0 %775  ;;  %v395_v29 = vpop.permute.xlu2 %394 }
 0x184   : > { %850 = vst.msk [vmem:[#allocation2 + $0xd8] sm:$0x7f] %vm827_vm7, %v776_v26 }
 0x185   : > { %1044 = vst.msk [vmem:[#allocation2 + $0xd8] sm:$0x3f] %vm1021_vm9, %v970_v58 }
 0x186   : > { %2506 = vmatmul.msk.bf16.gmra.mxu2 %vm170_vm0, %v3238_v46  ;;  %466 = vst.msk [vmem:[#allocation2 + $0xf1] sm:$0xff] %vm438_vm2, %v395_v29 }
 0x189   : > { %v1278_v41 = vpop.f32.mrf.mxu3  ;;  %v3585_v60 = vpop.f32.mrf.mxu2 }
 0x18a   : > { %v393_v34 = vpop.permute.xlu1 %392  ;;  %v1758_v36 = vld [vmem:[#allocation2 + $0xd0] sm:$0xff] }
 0x18b   : > { %465 = vst.msk [vmem:[#allocation2 + $0xe9] sm:$0x7f] %vm440_vm5, %v393_v34  ;;  %v391_v37 = vpop.permute.xlu0 %390  ;;  %v591_v40 = vpop.permute.xlu2 %590 }
 0x18c   : > { %464 = vst.msk [vmem:[#allocation2 + $0xe1] sm:$0xff] %vm438_vm2, %v391_v37  ;;  %v3550_v38 = vpop.f32.mrf.mxu0  ;;  %v1759_v39 = vld [vmem:[#allocation2 + $0xd8] sm:$0xff]  ;;  %v3621_v29 = vpop.f32.mrf.mxu1 }
 0x18d   : > { %657 = vst.msk [vmem:[#allocation2 + $0xe0] sm:$0xff] %vm632_vm6, %v585_v2  ;;  %v3553_v46 = vpack.c.bf16 %v1759_v39, %v1758_v36 }
 0x18f   : > { %2537 = vmatmul.msk.bf16.gmra.mxu0 %vm170_vm0, %v3431_v27  ;;  %2550 = vmatmul.msk.bf16.gmra.mxu1 %vm170_vm0, %v3553_v46 }
 0x190   : > { %2573 = vmatmul.msk.bf16.vlgmr.msra.gmra.mxu3 %vm170_vm0, %v3431_v27 }
 0x192   : > { %v778_v44 = vpop.permute.xlu1 %777 }
 0x193   : > { %851 = vst.msk [vmem:[#allocation2 + $0xe0] sm:$0xff] %vm825_vm8, %v778_v44  ;;  %v587_v42 = vpop.permute.xlu0 %586  ;;  %v976_v48 = vpop.permute.xlu2 %975 }
 0x194   : > { %658 = vst.msk [vmem:[#allocation2 + $0xe8] sm:$0xff] %vm632_vm6, %v587_v42  ;;  %v3565_v45 = vpop.f32.mrf.mxu0  ;;  %v1484_v51 = vpop.f32.mrf.mxu3 }
 0x195   : > { %852 = vst.msk [vmem:[#allocation2 + $0xe8] sm:$0x7f] %vm827_vm7, %v780_v13 }
 0x196   : > { %2507 = vmatmul.msk.bf16.gmra.mxu2 %vm170_vm0, %v3328_v31 }
 0x19a   : > { %v974_v54 = vpop.permute.xlu1 %973 }
 0x19b   : > { %1046 = vst.msk [vmem:[#allocation2 + $0xe8] sm:$0x3f] %vm1021_vm9, %v974_v54  ;;  %v972_v56 = vpop.permute.xlu0 %971  ;;  %v401_v59 = vpop.permute.xlu2 %400 }
 0x19c   : > { %1045 = vst.msk [vmem:[#allocation2 + $0xe0] sm:$0xff] %vm1019_vm10, %v972_v56  ;;  %v3578_v58 = vpop.f32.mrf.mxu0  ;;  %v3588_v2 = vpop.f32.mrf.mxu3 }
 0x19d   : > { %469 = vst.msk [vmem:[#allocation2 + $0x109] sm:$0x7f] %vm440_vm5, %v401_v59 }
 0x19f   : > { %2538 = vmatmul.msk.bf16.gmra.mxu0 %vm170_vm0, %v3464_v50 }
 0x1a0   : > { %2574 = vmatmul.msk.bf16.gmra.mxu3 %vm170_vm0, %v3464_v50 }
 0x1a2   : > { %v589_v61 = vpop.permute.xlu1 %588  ;;  %v1761_v63 = vld [vmem:[#allocation2 + $0xe8] sm:$0xff] }
 0x1a3   : > { %v397_v0 = vpop.permute.xlu0 %396  ;;  %659 = vst.msk [vmem:[#allocation2 + $0xf0] sm:$0xff] %vm632_vm6, %v589_v61  ;;  %v1760_v1 = vld [vmem:[#allocation2 + $0xe0] sm:$0xff]  ;;  %v786_v36 = vpop.permute.xlu2 %785 }
 0x1a4   : > { %467 = vst.msk [vmem:[#allocation2 + $0xf9] sm:$0x7f] %vm440_vm5, %v397_v0  ;;  %v3591_v3 = vpop.f32.mrf.mxu0  ;;  %v3593_v4 = vpack.c.bf16 %v1761_v63, %v1760_v1  ;;  %v3607_v16 = vpop.f32.mrf.mxu3 }
 0x1a5   : > { %660 = vst.msk [vmem:[#allocation2 + $0xf8] sm:$0xff] %vm632_vm6, %v591_v40 }
 0x1a6   : > { %2508 = vmatmul.msk.bf16.gmra.mxu2 %vm170_vm0, %v3381_v62  ;;  %2551 = vmatmul.msk.bf16.gmra.mxu1 %vm170_vm0, %v3593_v4 }
 0x1a9   : > { %v1191_v9 = vpop.f32.mrf.mxu2 }
 0x1aa   : > { %v3602_v23 = vadd.f32 %v1276_v32, %v1191_v9  ;;  %v784_v11 = vpop.permute.xlu1 %783 }
 0x1ab   : > { %v782_v12 = vpop.permute.xlu0 %781  ;;  %854 = vst.msk [vmem:[#allocation2 + $0xf8] sm:$0x7f] %vm827_vm7, %v784_v11  ;;  %v982_v1 = vpop.permute.xlu2 %981  ;;  %v1247_v11 = vadd.f32 %v3561_v43, %v3507_v8  ;;  %v1249_v8 = vadd.f32 %v3574_v55, %v3537_v28  ;;  %v1252_v55 = vadd.f32 %v3595_v5, %v3550_v38 }
 0x1ac   : > { %853 = vst.msk [vmem:[#allocation2 + $0xf0] sm:$0xff] %vm825_vm8, %v782_v12  ;;  %v1614_v13 = vpop.f32.mrf.mxu0  ;;  %v3625_v32 = vpop.f32.mrf.mxu3 }
 0x1ad   : > { %1047 = vst.msk [vmem:[#allocation2 + $0xf0] sm:$0xff] %vm1019_vm10, %v976_v48  ;;  %v1244_v48 = vadd.f32 %v3545_v33, %v3484_v14 }
 0x1af   : > { %2588 = vmatmul.msk.bf16.vlgmr.msra.gmra.mxu0 %vm170_vm0, %v3464_v50 }
 0x1b0   : > { %2575 = vmatmul.msk.bf16.gmra.mxu3 %vm170_vm0, %v3511_v57 }
 0x1b1   : > { %v1193_v19 = vpop.f32.mrf.mxu2 }
 0x1b2   : > { %v3615_v22 = vadd.f32 %v1278_v41, %v1193_v19  ;;  %v399_v7 = vpop.permute.xlu1 %398 }
 0x1b3   : > { %v978_v25 = vpop.permute.xlu0 %977  ;;  %468 = vst.msk [vmem:[#allocation2 + $0x101] sm:$0xff] %vm438_vm2, %v399_v7 }
 0x1b4   : > { %1048 = vst.msk [vmem:[#allocation2 + $0xf8] sm:$0x3f] %vm1021_vm9, %v978_v25  ;;  %v1616_v26 = vpop.f32.mrf.mxu0  ;;  %v1762_v41 = vld [vmem:[#allocation2 + $0xf0] sm:$0xff]  ;;  %v1494_v56 = vpop.f32.mrf.mxu3 }
 0x1b6   : > { %2558 = vmatmul.msk.bf16.vlgmr.msra.gmra.mxu2 %vm170_vm0, %v3328_v31  ;;  %v3632_v31 = vld [vmem:[%s3893_s2] ss:$0 sm:$0xff] }
 0x1b9   : > { %v1354_v34 = vpop.f32.mrf.mxu2 }
 0x1ba   : > { %v1394_v37 = vadd.f32 %v1354_v34, %v1242_v30  ;;  %v595_v39 = vpop.permute.xlu1 %594 }
 0x1bb   : > { %v593_v40 = vpop.permute.xlu0 %592  ;;  %662 = vst.msk [vmem:[#allocation2 + $0x108] sm:$0xff] %vm632_vm6, %v595_v39  ;;  %v1763_v44 = vld [vmem:[#allocation2 + $0xf8] sm:$0xff] }
 0x1bc   : > { %v1524_v42 = vadd.f32 %v1484_v51, %v1394_v37  ;;  %661 = vst.msk [vmem:[#allocation2 + $0x100] sm:$0xff] %vm632_vm6, %v593_v40  ;;  %v1619_v52 = vpop.f32.mrf.mxu0  ;;  %v3635_v15 = vpack.c.bf16 %v1763_v44, %v1762_v41  ;;  %v3649_v51 = vpop.f32.mrf.mxu1 }
 0x1bd   : > { %855 = vst.msk [vmem:[#allocation2 + $0x100] sm:$0xff] %vm825_vm8, %v786_v36  ;;  %v1496_v30 = vpop.f32.mrf.mxu3 }
 0x1be   : > { %v1654_v47 = vadd.f32 %v1614_v13, %v1524_v42  ;;  %2552 = vmatmul.msk.bf16.gmra.mxu1 %vm170_vm0, %v3635_v15 }
 0x1bf   : > { %2589 = vmatmul.msk.bf16.gmra.mxu0 %vm170_vm0, %v3511_v57 }
 0x1c0   : > { %v1673_v49 = vadd.f32 %v3632_v31, %v1654_v47  ;;  %2576 = vmatmul.msk.bf16.gmra.mxu3 %vm170_vm0, %v3553_v46 }
 0x1c1   : > { %v1356_v54 = vpop.f32.mrf.mxu2 }
 0x1c2   : > { %v1689_v59 = vmax.f32 %v1673_v49, 0.0  ;;  %v1395_v61 = vadd.f32 %v1356_v54, %v1244_v48  ;;  %v980_v63 = vpop.permute.xlu1 %979 }
 0x1c3   : > { %v788_v0 = vpop.permute.xlu0 %787  ;;  %1049 = vst.msk [vmem:[#allocation2 + $0x100] sm:$0xff] %vm1019_vm10, %v980_v63 }
 0x1c4   : > { %1705 = vst [vmem:[%s3652_s8] sm:$0xff] %v1689_v59  ;;  %v1525_v14 = vadd.f32 %v3588_v2, %v1395_v61  ;;  %v1621_v33 = vpop.f32.mrf.mxu0  ;;  %v3663_v25 = vpop.f32.mrf.mxu1 }
 0x1c5   : > { %856 = vst.msk [vmem:[#allocation2 + $0x108] sm:$0x7f] %vm827_vm7, %v788_v0 }
 0x1c6   : > { %v1655_v9 = vadd.f32 %v1616_v26, %v1525_v14  ;;  %1050 = vst.msk [vmem:[#allocation2 + $0x108] sm:$0x3f] %vm1021_vm9, %v982_v1  ;;  %2559 = vmatmul.msk.bf16.gmra.mxu2 %vm170_vm0, %v3381_v62 }
 0x1c8   : > { %v1674_v12 = vadd.f32 %v3632_v31, %v1655_v9 }
 0x1c9   : > { %v1359_v13 = vpop.f32.mrf.mxu2 }
 0x1ca   : > { %v1690_v19 = vmax.f32 %v1674_v12, 0.0  ;;  %v1396_v7 = vadd.f32 %v1359_v13, %v1247_v11  ;;  %v1764_v2 = vld [vmem:[#allocation2 + $0x100] sm:$0xff]  ;;  %v1257_v11 = vadd.f32 %v3621_v29, %v3578_v58  ;;  %v597_v58 = vpop.permute.xlu2 %596 }
 0x1cc   : > { %1706 = vst [vmem:[%s3652_s8 + $0x8] sm:$0xff] %v1690_v19  ;;  %v1526_v26 = vadd.f32 %v3607_v16, %v1396_v7  ;;  %v1624_v34 = vpop.f32.mrf.mxu0  ;;  %v3680_v42 = vpop.f32.mrf.mxu1 }
 0x1cd   : > { %v1765_v36 = vld [vmem:[#allocation2 + $0x108] sm:$0xff] }
 0x1ce   : > { %v1656_v37 = vadd.f32 %v1619_v52, %v1526_v26  ;;  %v3667_v62 = vpack.c.bf16 %v1765_v36, %v1764_v2  ;;  %v1499_v52 = vpop.f32.mrf.mxu3  ;;  %v242_v36 = vld [vmem:[%s2821_s28 + $0xf8] sm:$0x3f]  ;;  %s2627_s28 = sshll.u32 %s2789_s16, 8  ;;  %s2383_s16 = scalar_lea.sflag [#allocation4], %s161_s4 }
 0x1cf   : > { %2590 = vmatmul.msk.bf16.gmra.mxu0 %vm170_vm0, %v3553_v46  ;;  %277 = vst.msk [vmem:[#allocation2 + $0x11a] sm:$0x3f] %vm246_vm4, %v242_v36  ;;  %s2394_s11 = scalar_lea.hbm %s3894_s3, %s2627_s28 }
 0x1d0   : > { %v1675_v43 = vadd.f32 %v3632_v31, %v1656_v37  ;;  %2553 = vmatmul.msk.bf16.gmra.mxu1 %vm170_vm0, %v3667_v62  ;;  %2577 = vmatmul.msk.bf16.gmra.mxu3 %vm170_vm0, %v3593_v4  ;;  %s2397_s19 = sshll.u32 %s2394_s11, 4  ;;  %s2398_s19 = int_to_ptr.hbm [resolvable:$true] %s2397_s19 }
 0x1d1   : > { %v1361_v16 = vpop.f32.mrf.mxu2  ;;  %s2692_s20 = sshra.s32 %s2398_s19, 4  ;;  %s2693_s20 = int_to_ptr.hbm [resolvable:$true] %s2692_s20 }
 0x1d2   : > { %v1691_v39 = vmax.f32 %v1675_v43, 0.0  ;;  %v1397_v40 = vadd.f32 %v1361_v16, %v1249_v8  ;;  %v1259_v8 = vadd.f32 %v3649_v51, %v3591_v3  ;;  %s2694_s24 = scalar_lea.hbm %s2693_s20, 256  ;;  %p2699_p0 = scmp.lt.s32.totalorder %s2693_s20, %s3894_s3 }
 0x1d3   : > { %p2695_p11 = scmp.ne.s32.totalorder %s2693_s20, %s2694_s24  ;;  %p2700_p1 = scmp.lt.s32.totalorder %s2698_s26, %s2694_s24 }
 0x1d4   : > { %1707 = vst [vmem:[%s3652_s8 + $0x10] sm:$0xff] %v1691_v39  ;;  %v1527_v41 = vadd.f32 %v3625_v32, %v1397_v40  ;;  %v1626_v44 = vpop.f32.mrf.mxu0  ;;  %v3688_v63 = vpop.f32.mrf.mxu1 }
 0x1d5   : > { %p2696_p12 = pnand %p2695_p11, %p2806_p5  ;;  %p2701_p2 = por %p2700_p1, %p2699_p0 }
 0x1d6   : > { %v1657_v28 = vadd.f32 %v1621_v33, %v1527_v41  ;;  %2560 = vmatmul.msk.bf16.gmra.mxu2 %vm170_vm0, %v3431_v27  ;;  %v1254_v27 = vadd.f32 %v3609_v18, %v3565_v45  ;;  %v1501_v0 = vpop.f32.mrf.mxu3  ;;  %v405_v45 = vpop.permute.xlu1 %404 }
 0x1d7   : > { %v403_v18 = vpop.permute.xlu0 %402  ;;  %471 = vst.msk [vmem:[#allocation2 + $0x119] sm:$0x7f] %vm440_vm5, %v405_v45  ;;  %p2697_p13 = pneg %p2696_p12 }
 0x1d8   : > { %v1676_v47 = vadd.f32 %v3632_v31, %v1657_v28  ;;  %470 = vst.msk [vmem:[#allocation2 + $0x111] sm:$0xff] %vm438_vm2, %v403_v18  ;;  %v792_v28 = vpop.permute.xlu2 %791 }
 0x1d9   : > { %v1364_v48 = vpop.f32.mrf.mxu2  ;;  %663 = vst.msk [vmem:[#allocation2 + $0x110] sm:$0xff] %vm632_vm6, %v597_v58  ;;  %p2702_p3 = pnand %p2701_p2, %p2697_p13 }
 0x1da   : > { %v1692_v49 = vmax.f32 %v1676_v47, 0.0  ;;  %v1398_v54 = vadd.f32 %v1364_v48, %v1252_v55 }
 0x1dc   : > { %1708 = vst [vmem:[%s3652_s8 + $0x18] sm:$0xff] %v1692_v49  ;;  %v1528_v59 = vadd.f32 %v1494_v56, %v1398_v54  ;;  %v1629_v32 = vpop.f32.mrf.mxu0  ;;  %v3706_v13 = vpop.f32.mrf.mxu1 }
 0x1de   : > { %v1658_v61 = vadd.f32 %v1624_v34, %v1528_v59  ;;  %v1504_v7 = vpop.f32.mrf.mxu3  ;;  %v790_v29 = vpop.permute.xlu1 %789 }
 0x1df   : > { %2591 = vmatmul.msk.bf16.gmra.mxu0 %vm170_vm0, %v3593_v4  ;;  %v599_v37 = vpop.permute.xlu0 %598  ;;  %857 = vst.msk [vmem:[#allocation2 + $0x110] sm:$0xff] %vm825_vm8, %v790_v29 }
 0x1e0   : > { %v1677_v38 = vadd.f32 %v3632_v31, %v1658_v61  ;;  %2578 = vmatmul.msk.bf16.gmra.mxu3 %vm170_vm0, %v3635_v15  ;;  %2603 = vmatmul.msk.bf16.vlgmr.msra.gmra.mxu1 %vm170_vm0, %v3511_v57  ;;  %664 = vst.msk [vmem:[#allocation2 + $0x118] sm:$0xff] %vm632_vm6, %v599_v37 }
 0x1e1   : > { %v1366_v5 = vpop.f32.mrf.mxu2  ;;  %858 = vst.msk [vmem:[#allocation2 + $0x118] sm:$0x7f] %vm827_vm7, %v792_v28 }
 0x1e2   : > { %v1693_v56 = vmax.f32 %v1677_v38, 0.0  ;;  %v1399_v1 = vadd.f32 %v1366_v5, %v1254_v27  ;;  %v1264_v38 = vadd.f32 %v3424_v21, %v3420_v20 }
 0x1e4   : > { %1709 = vst [vmem:[%s3652_s8 + $0x20] sm:$0xff] %v1693_v56  ;;  %v1529_v14 = vadd.f32 %v1496_v30, %v1399_v1  ;;  %v1631_v33 = vpop.f32.mrf.mxu0  ;;  %v3723_v16 = vpop.f32.mrf.mxu1 }
 0x1e6   : > { %v1659_v9 = vadd.f32 %v1626_v44, %v1529_v14  ;;  %2561 = vmatmul.msk.bf16.gmra.mxu2 %vm170_vm0, %v3464_v50  ;;  %v1506_v44 = vpop.f32.mrf.mxu3  ;;  %v986_v55 = vpop.permute.xlu1 %985 }
 0x1e7   : > { %v984_v47 = vpop.permute.xlu0 %983  ;;  %1052 = vst.msk [vmem:[#allocation2 + $0x118] sm:$0x3f] %vm1021_vm9, %v986_v55 }
 0x1e8   : > { %v1678_v12 = vadd.f32 %v3632_v31, %v1659_v9  ;;  %1051 = vst.msk [vmem:[#allocation2 + $0x110] sm:$0xff] %vm1019_vm10, %v984_v47 }
 0x1e9   : > { %v1369_v19 = vpop.f32.mrf.mxu2 }
 0x1ea   : > { %v1694_v2 = vmax.f32 %v1678_v12, 0.0  ;;  %v1400_v30 = vadd.f32 %v1369_v19, %v1257_v11 }
 0x1ec   : > { %1710 = vst [vmem:[%s3652_s8 + $0x28] sm:$0xff] %v1694_v2  ;;  %v1530_v26 = vadd.f32 %v1499_v52, %v1400_v30  ;;  %v1634_v34 = vpop.f32.mrf.mxu0 }
 0x1ee   : > { %v1660_v50 = vadd.f32 %v1629_v32, %v1530_v26  ;;  %v3734_v32 = vpop.f32.mrf.mxu1 }
 0x1ef   : > { %2592 = vmatmul.msk.bf16.gmra.mxu0 %vm170_vm0, %v3635_v15 }
 0x1f0   : > { %v1679_v43 = vadd.f32 %v3632_v31, %v1660_v50  ;;  %2579 = vmatmul.msk.bf16.gmra.mxu3 %vm170_vm0, %v3667_v62  ;;  %2604 = vmatmul.msk.bf16.gmra.mxu1 %vm170_vm0, %v3553_v46 }
 0x1f1   : > { %v1371_v39 = vpop.f32.mrf.mxu2 }
 0x1f2   : > { %v1695_v40 = vmax.f32 %v1679_v43, 0.0  ;;  %v1401_v41 = vadd.f32 %v1371_v39, %v1259_v8 }
 0x1f4   : > { %1711 = vst [vmem:[%s3652_s8 + $0x30] sm:$0xff] %v1695_v40  ;;  %v1531_v3 = vadd.f32 %v1501_v0, %v1401_v41  ;;  %v1636_v52 = vpop.f32.mrf.mxu0  ;;  %v1963_v0 = vld [vmem:[#allocation2 + $0x118] sm:$0xff]  ;;  %v2092_v40 = vld [vmem:[#allocation2 + $0x128] sm:$0xff] }
 0x1f6   : > { %v1661_v51 = vadd.f32 %v1631_v33, %v1531_v3  ;;  %2562 = vmatmul.msk.bf16.gmra.mxu2 %vm170_vm0, %v3511_v57  ;;  %v1509_v57 = vpop.f32.mrf.mxu3 }
 0x1f8   : > { %v1680_v48 = vadd.f32 %v3632_v31, %v1661_v51 }
 0x1f9   : > { %v1374_v49 = vpop.f32.mrf.mxu2 }
 0x1fa   : > { %v1696_v54 = vmax.f32 %v1680_v48, 0.0  ;;  %v1402_v59 = vadd.f32 %v1374_v49, %v3404_v10  ;;  %v1962_v10 = vld [vmem:[#allocation2 + $0x110] sm:$0xff] }
 0x1fb   : > { %v3744_v14 = vpack.c.bf16 %v1963_v0, %v1962_v10  ;;  %v3746_v45 = vpop.f32.mrf.mxu1 }
 0x1fc   : > { %1712 = vst [vmem:[%s3652_s8 + $0x38] sm:$0xff] %v1696_v54  ;;  %v1532_v61 = vadd.f32 %v1504_v7, %v1402_v59  ;;  %v1639_v56 = vpop.f32.mrf.mxu0 }
 0x1fe   : > { %v1662_v27 = vadd.f32 %v1634_v34, %v1532_v61  ;;  %v1511_v18 = vpop.f32.mrf.mxu3 }
 0x1ff   : > { %2593 = vmatmul.msk.bf16.gmra.mxu0 %vm170_vm0, %v3667_v62 }
 0x200   : > { %v1681_v5 = vadd.f32 %v3632_v31, %v1662_v27  ;;  %2605 = vmatmul.msk.bf16.gmra.mxu1 %vm170_vm0, %v3593_v4  ;;  %2580 = vmatmul.msk.bf16.gmra.mxu3 %vm170_vm0, %v3744_v14 }
 0x201   : > { %v1376_v1 = vpop.f32.mrf.mxu2 }
 0x202   : > { %v1697_v33 = vmax.f32 %v1681_v5, 0.0  ;;  %v1403_v9 = vadd.f32 %v1376_v1, %v1264_v38 }
 0x203   : > { %v3756_v26 = vpop.f32.mrf.mxu1 }
 0x204   : > { %1713 = vst [vmem:[%s3652_s8 + $0x40] sm:$0xff] %v1697_v33  ;;  %v1533_v20 = vadd.f32 %v1506_v44, %v1403_v9  ;;  %v1641_v7 = vpop.f32.mrf.mxu0 }
 0x206   : > { %v1663_v21 = vadd.f32 %v1636_v52, %v1533_v20  ;;  %2563 = vmatmul.msk.bf16.gmra.mxu2 %vm170_vm0, %v3553_v46  ;;  %v1269_v46 = vadd.f32 %v3472_v53, %v3503_v6  ;;  %v1514_v58 = vpop.f32.mrf.mxu3  ;;  %v2091_v6 = vld [vmem:[#allocation2 + $0x120] sm:$0xff] }
 0x207   : > { %v2100_v51 = vpack.c.bf16 %v2092_v40, %v2091_v6 }
 0x208   : > { %v1682_v11 = vadd.f32 %v3632_v31, %v1663_v21 }
 0x209   : > { %v1379_v12 = vpop.f32.mrf.mxu2 }
 0x20a   : > { %v1698_v19 = vmax.f32 %v1682_v11, 0.0  ;;  %v1404_v2 = vadd.f32 %v1379_v12, %v3445_v35 }
 0x20c   : > { %1714 = vst [vmem:[%s3652_s8 + $0x48] sm:$0xff] %v1698_v19  ;;  %v1534_v30 = vadd.f32 %v1509_v57, %v1404_v2  ;;  %v1644_v37 = vpop.f32.mrf.mxu0  ;;  %v3768_v39 = vpop.f32.mrf.mxu1 }
 0x20e   : > { %v1664_v34 = vadd.f32 %v1639_v56, %v1534_v30  ;;  %v1516_v52 = vpop.f32.mrf.mxu3 }
 0x20f   : > { %2594 = vmatmul.msk.bf16.gmra.mxu0 %vm170_vm0, %v3744_v14 }
 0x210   : > { %v1683_v36 = vadd.f32 %v3632_v31, %v1664_v34  ;;  %2606 = vmatmul.msk.bf16.gmra.mxu1 %vm170_vm0, %v3635_v15 }
 0x211   : > { %v1381_v50 = vpop.f32.mrf.mxu2 }
 0x212   : > { %v1699_v29 = vmax.f32 %v1683_v36, 0.0  ;;  %v1405_v35 = vadd.f32 %v1381_v50, %v1269_v46 }
 0x214   : > { %1715 = vst [vmem:[%s3652_s8 + $0x50] sm:$0xff] %v1699_v29  ;;  %v1535_v8 = vadd.f32 %v1511_v18, %v1405_v35  ;;  %v1646_v55 = vpop.f32.mrf.mxu0  ;;  %v3779_v49 = vpop.f32.mrf.mxu1  ;;  %v2221_v29 = vld [vmem:[#allocation2 + $0x138] sm:$0xff] }
 0x216   : > { %v1665_v43 = vadd.f32 %v1641_v7, %v1535_v8  ;;  %2564 = vmatmul.msk.bf16.gmra.mxu2 %vm170_vm0, %v3593_v4  ;;  %v1274_v4 = vadd.f32 %v3519_v17, %v3585_v60  ;;  %v1519_v57 = vpop.f32.mrf.mxu3 }
 0x218   : > { %v1684_v53 = vadd.f32 %v3632_v31, %v1665_v43 }
 0x219   : > { %v1384_v41 = vpop.f32.mrf.mxu2 }
 0x21a   : > { %v1700_v44 = vmax.f32 %v1684_v53, 0.0  ;;  %v1406_v3 = vadd.f32 %v1384_v41, %v3534_v24 }
 0x21c   : > { %1716 = vst [vmem:[%s3652_s8 + $0x58] sm:$0xff] %v1700_v44  ;;  %v1536_v28 = vadd.f32 %v1514_v58, %v1406_v3  ;;  %v1649_v0 = vpop.f32.mrf.mxu0  ;;  %v2220_v58 = vld [vmem:[#allocation2 + $0x130] sm:$0xff] }
 0x21d   : > { %v2229_v35 = vpack.c.bf16 %v2221_v29, %v2220_v58 }
 0x21e   : > { %v1666_v47 = vadd.f32 %v1644_v37, %v1536_v28  ;;  %v1521_v1 = vpop.f32.mrf.mxu3 }
 0x21f   : > { %2595 = vmatmul.msk.bf16.gmra.mxu0 %vm170_vm0, %v2100_v51 }
 0x220   : > { %v1685_v48 = vadd.f32 %v3632_v31, %v1666_v47  ;;  %2607 = vmatmul.msk.bf16.gmra.mxu1 %vm170_vm0, %v3667_v62 }
 0x221   : > { %v1386_v24 = vpop.f32.mrf.mxu2 }
 0x222   : > { %v1701_v54 = vmax.f32 %v1685_v48, 0.0  ;;  %v1407_v59 = vadd.f32 %v1386_v24, %v1274_v4 }
 0x223   : > { %v3785_v60 = vpop.f32.mrf.mxu1 }
 0x224   : > { %1717 = vst [vmem:[%s3652_s8 + $0x60] sm:$0xff] %v1701_v54  ;;  %v1537_v61 = vadd.f32 %v1516_v52, %v1407_v59  ;;  %v1651_v9 = vpop.f32.mrf.mxu0 }
 0x226   : > { %v1667_v27 = vadd.f32 %v1646_v55, %v1537_v61  ;;  %2565 = vmatmul.msk.bf16.gmra.mxu2 %vm170_vm0, %v3635_v15  ;;  %v2020_v7 = vpop.f32.mrf.mxu3 }
 0x228   : > { %v1686_v17 = vadd.f32 %v3632_v31, %v1667_v27 }
 0x229   : > { %v1389_v62 = vpop.f32.mrf.mxu2 }
 0x22a   : > { %v1702_v38 = vmax.f32 %v1686_v17, 0.0  ;;  %v1408_v5 = vadd.f32 %v1389_v62, %v3602_v23 }
 0x22b   : > { %v3793_v18 = vpop.f32.mrf.mxu1 }
 0x22c   : > { %1718 = vst [vmem:[%s3652_s8 + $0x68] sm:$0xff] %v1702_v38  ;;  %v1538_v56 = vadd.f32 %v1519_v57, %v1408_v5  ;;  %v2149_v34 = vpop.f32.mrf.mxu0 }
 0x22e   : > { %v1668_v10 = vadd.f32 %v1649_v0, %v1538_v56 }
 0x230   : > { %v1687_v33 = vadd.f32 %v3632_v31, %v1668_v10  ;;  %2608 = vmatmul.msk.bf16.gmra.mxu1 %vm170_vm0, %v3744_v14 }
 0x231   : > { %v1391_v15 = vpop.f32.mrf.mxu2 }
 0x232   : > { %v1703_v20 = vmax.f32 %v1687_v33, 0.0  ;;  %v1409_v21 = vadd.f32 %v1391_v15, %v3615_v22  ;;  %v2022_v22 = vpop.f32.mrf.mxu3 }
 0x234   : > { %1719 = vst [vmem:[%s3652_s8 + $0x70] sm:$0xff] %v1703_v20  ;;  %v1539_v11 = vadd.f32 %v1521_v1, %v1409_v21  ;;  %v2151_v36 = vpop.f32.mrf.mxu0 }
 0x236   : > { %v1669_v23 = vadd.f32 %v1651_v9, %v1539_v11 }
 0x238   : > { %v1688_v12 = vadd.f32 %v3632_v31, %v1669_v23 }
 0x239   : > { %v1907_v19 = vpop.f32.mrf.mxu2 }
 0x23a   : > { %v1704_v2 = vmax.f32 %v1688_v12, 0.0  ;;  %v2025_v8 = vpop.f32.mrf.mxu3  ;;  %v1908_v6 = vadd.f32 %v1907_v19, %v3663_v25 }
 0x23b   : > { %v3797_v30 = vpop.f32.mrf.mxu1 }
 0x23c   : > { %1720 = vst [vmem:[%s3652_s8 + $0x78] sm:$0xff] %v1704_v2  ;;  %v2154_v43 = vpop.f32.mrf.mxu0  ;;  %v2060_v44 = vadd.f32 %v2020_v7, %v1908_v6 }
 0x23e   : > { %v2189_v28 = vadd.f32 %v2149_v34, %v2060_v44 }
 0x240   : > { %2609 = vmatmul.msk.bf16.gmra.mxu1 %vm170_vm0, %v2100_v51 }
 0x241   : > { %v1909_v14 = vpop.f32.mrf.mxu2 }
 0x242   : > { %v2027_v41 = vpop.f32.mrf.mxu3  ;;  %v1910_v52 = vadd.f32 %v1909_v14, %v3680_v42 }
 0x243   : > { %v3801_v46 = vpop.f32.mrf.mxu1 }
 0x244   : > { %v2156_v3 = vpop.f32.mrf.mxu0  ;;  %v2061_v4 = vadd.f32 %v2022_v22, %v1910_v52 }
 0x246   : > { %v2190_v61 = vadd.f32 %v2151_v36, %v2061_v4 }
 0x249   : > { %v1912_v50 = vpop.f32.mrf.mxu2 }
 0x24a   : > { %v2030_v24 = vpop.f32.mrf.mxu3  ;;  %v1913_v25 = vadd.f32 %v1912_v50, %v3688_v63 }
 0x24c   : > { %v2159_v59 = vpop.f32.mrf.mxu0  ;;  %v2062_v17 = vadd.f32 %v2025_v8, %v1913_v25 }
 0x24d   : > { %v3803_v37 = vpop.f32.mrf.mxu1 }
 0x24e   : > { %v2191_v56 = vadd.f32 %v2154_v43, %v2062_v17 }
 0x250   : > { %2610 = vmatmul.msk.bf16.gmra.mxu1 %vm170_vm0, %v2229_v35 }
 0x251   : > { %v1914_v53 = vpop.f32.mrf.mxu2 }
 0x252   : > { %v2032_v38 = vpop.f32.mrf.mxu3  ;;  %v1915_v5 = vadd.f32 %v1914_v53, %v3706_v13 }
 0x254   : > { %v2161_v1 = vpop.f32.mrf.mxu0  ;;  %v2063_v15 = vadd.f32 %v2027_v41, %v1915_v5 }
 0x255   : > { %v3807_v40 = vpop.f32.mrf.mxu1 }
 0x256   : > { %v2192_v11 = vadd.f32 %v2156_v3, %v2063_v15 }
 0x259   : > { %v1917_v51 = vpop.f32.mrf.mxu2 }
 0x25a   : > { %v1918_v21 = vadd.f32 %v1917_v51, %v3723_v16  ;;  %v2035_v12 = vpop.f32.mrf.mxu3 }
 0x25c   : > { %v2064_v7 = vadd.f32 %v2030_v24, %v1918_v21  ;;  %v2164_v13 = vpop.f32.mrf.mxu0 }
 0x25d   : > { %v2278_v55 = vpop.f32.mrf.mxu1 }
 0x25e   : > { %v2318_v47 = vadd.f32 %v2278_v55, %v2189_v28  ;;  %v2193_v36 = vadd.f32 %v2159_v59, %v2064_v7 }
 0x260   : > { %v2334_v48 = vadd.f32 %v3632_v31, %v2318_v47 }
 0x261   : > { %v1919_v57 = vpop.f32.mrf.mxu2 }
 0x262   : > { %v2350_v54 = vmax.f32 %v2334_v48, 0.0  ;;  %v1920_v22 = vadd.f32 %v1919_v57, %v3734_v32  ;;  %v2037_v29 = vpop.f32.mrf.mxu3 }
 0x264   : > { %2366 = vst [vmem:[%s3652_s8 + $0x80] sm:$0xff] %v2350_v54  ;;  %v2065_v16 = vadd.f32 %v2032_v38, %v1920_v22  ;;  %v2166_v8 = vpop.f32.mrf.mxu0 }
 0x265   : > { %v2280_v27 = vpop.f32.mrf.mxu1 }
 0x266   : > { %v2319_v0 = vadd.f32 %v2280_v27, %v2190_v61  ;;  %v2194_v41 = vadd.f32 %v2161_v1, %v2065_v16 }
 0x268   : > { %v2335_v42 = vadd.f32 %v3632_v31, %v2319_v0 }
 0x269   : > { %v1922_v63 = vpop.f32.mrf.mxu2 }
 0x26a   : > { %v2351_v62 = vmax.f32 %v2335_v42, 0.0  ;;  %v1923_v6 = vadd.f32 %v1922_v63, %v3746_v45  ;;  %v2040_v52 = vpop.f32.mrf.mxu3 }
 0x26c   : > { %2367 = vst [vmem:[%s3652_s8 + $0x88] sm:$0xff] %v2351_v62  ;;  %v2066_v51 = vadd.f32 %v2035_v12, %v1923_v6  ;;  %v2169_v55 = vpop.f32.mrf.mxu0 }
 0x26d   : > { %v2283_v10 = vpop.f32.mrf.mxu1 }
 0x26e   : > { %v2320_v33 = vadd.f32 %v2283_v10, %v2191_v56  ;;  %v2195_v4 = vadd.f32 %v2164_v13, %v2066_v51 }
 0x270   : > { %v2336_v9 = vadd.f32 %v3632_v31, %v2320_v33 }
 0x271   : > { %v1924_v34 = vpop.f32.mrf.mxu2 }
 0x272   : > { %v2352_v20 = vmax.f32 %v2336_v9, 0.0  ;;  %v1925_v47 = vadd.f32 %v1924_v34, %v3756_v26  ;;  %v2042_v61 = vpop.f32.mrf.mxu3 }
 0x274   : > { %2368 = vst [vmem:[%s3652_s8 + $0x90] sm:$0xff] %v2352_v20  ;;  %v2067_v45 = vadd.f32 %v2037_v29, %v1925_v47  ;;  %v2171_v42 = vpop.f32.mrf.mxu0 }
 0x275   : > { %v2285_v23 = vpop.f32.mrf.mxu1 }
 0x276   : > { %v2321_v19 = vadd.f32 %v2285_v23, %v2192_v11  ;;  %v2196_v27 = vadd.f32 %v2166_v8, %v2067_v45 }
 0x278   : > { %v2337_v2 = vadd.f32 %v3632_v31, %v2321_v19 }
 0x279   : > { %v1927_v53 = vpop.f32.mrf.mxu2 }
 0x27a   : > { %v2353_v14 = vmax.f32 %v2337_v2, 0.0  ;;  %v1928_v57 = vadd.f32 %v1927_v53, %v3768_v39  ;;  %v2045_v33 = vpop.f32.mrf.mxu3 }
 0x27c   : > { %2369 = vst [vmem:[%s3652_s8 + $0x98] sm:$0xff] %v2353_v14  ;;  %v2068_v26 = vadd.f32 %v2040_v52, %v1928_v57  ;;  %v2174_v9 = vpop.f32.mrf.mxu0 }
 0x27d   : > { %v2288_v50 = vpop.f32.mrf.mxu1 }
 0x27e   : > { %v2322_v58 = vadd.f32 %v2288_v50, %v2193_v36  ;;  %v2197_v10 = vadd.f32 %v2169_v55, %v2068_v26 }
 0x280   : > { %v2338_v35 = vadd.f32 %v3632_v31, %v2322_v58 }
 0x281   : > { %v1929_v48 = vpop.f32.mrf.mxu2 }
 0x282   : > { %v2354_v43 = vmax.f32 %v2338_v35, 0.0  ;;  %v1930_v56 = vadd.f32 %v1929_v48, %v3779_v49  ;;  %v2047_v7 = vpop.f32.mrf.mxu3 }
 0x284   : > { %2370 = vst [vmem:[%s3652_s8 + $0xa0] sm:$0xff] %v2354_v43  ;;  %v2069_v15 = vadd.f32 %v2042_v61, %v1930_v56  ;;  %v2176_v34 = vpop.f32.mrf.mxu0 }
 0x285   : > { %v2290_v44 = vpop.f32.mrf.mxu1 }
 0x286   : > { %v2323_v3 = vadd.f32 %v2290_v44, %v2194_v41  ;;  %v2198_v23 = vadd.f32 %v2171_v42, %v2069_v15 }
 0x288   : > { %v2339_v32 = vadd.f32 %v3632_v31, %v2323_v3 }
 0x289   : > { %v1932_v62 = vpop.f32.mrf.mxu2 }
 0x28a   : > { %v2355_v28 = vmax.f32 %v2339_v32, 0.0  ;;  %v1933_v11 = vadd.f32 %v1932_v62, %v3785_v60  ;;  %v2050_v16 = vpop.f32.mrf.mxu3 }
 0x28c   : > { %2371 = vst [vmem:[%s3652_s8 + $0xa8] sm:$0xff] %v2355_v28  ;;  %v2070_v49 = vadd.f32 %v2045_v33, %v1933_v11  ;;  %v2179_v8 = vpop.f32.mrf.mxu0 }
 0x28d   : > { %v2293_v24 = vpop.f32.mrf.mxu1 }
 0x28e   : > { %v2324_v54 = vadd.f32 %v2293_v24, %v2195_v4  ;;  %v2199_v36 = vadd.f32 %v2174_v9, %v2070_v49 }
 0x290   : > { %v2340_v25 = vadd.f32 %v3632_v31, %v2324_v54 }
 0x291   : > { %v1934_v20 = vpop.f32.mrf.mxu2 }
 0x292   : > { %v2356_v59 = vmax.f32 %v2340_v25, 0.0  ;;  %v1935_v22 = vadd.f32 %v1934_v20, %v3793_v18  ;;  %v2052_v32 = vpop.f32.mrf.mxu3 }
 0x294   : > { %2372 = vst [vmem:[%s3652_s8 + $0xb0] sm:$0xff] %v2356_v59  ;;  %v2071_v29 = vadd.f32 %v2047_v7, %v1935_v22  ;;  %v2181_v55 = vpop.f32.mrf.mxu0 }
 0x295   : > { %v2295_v0 = vpop.f32.mrf.mxu1 }
 0x296   : > { %v2325_v17 = vadd.f32 %v2295_v0, %v2196_v27  ;;  %v2200_v53 = vadd.f32 %v2176_v34, %v2071_v29 }
 0x298   : > { %v2341_v38 = vadd.f32 %v3632_v31, %v2325_v17 }
 0x299   : > { %v1937_v14 = vpop.f32.mrf.mxu2 }
 0x29a   : > { %v2357_v5 = vmax.f32 %v2341_v38, 0.0  ;;  %v1938_v43 = vadd.f32 %v1937_v14, %v3797_v30  ;;  %v2055_v59 = vpop.f32.mrf.mxu3 }
 0x29c   : > { %2373 = vst [vmem:[%s3652_s8 + $0xb8] sm:$0xff] %v2357_v5  ;;  %v2072_v3 = vadd.f32 %v2050_v16, %v1938_v43  ;;  %v2184_v27 = vpop.f32.mrf.mxu0 }
 0x29d   : > { %v2298_v1 = vpop.f32.mrf.mxu1 }
 0x29e   : > { %v2326_v63 = vadd.f32 %v2298_v1, %v2197_v10  ;;  %v2201_v52 = vadd.f32 %v2179_v8, %v2072_v3 }
 0x2a0   : > { %v2342_v39 = vadd.f32 %v3632_v31, %v2326_v63 }
 0x2a1   : > { %v1939_v6 = vpop.f32.mrf.mxu2 }
 0x2a2   : > { %v2358_v21 = vmax.f32 %v2342_v39, 0.0  ;;  %v1940_v28 = vadd.f32 %v1939_v6, %v3801_v46 }
 0x2a4   : > { %2374 = vst [vmem:[%s3652_s8 + $0xc0] sm:$0xff] %v2358_v21  ;;  %v2073_v30 = vadd.f32 %v2052_v32, %v1940_v28  ;;  %v2186_v1 = vpop.f32.mrf.mxu0 }
 0x2a5   : > { %v2300_v12 = vpop.f32.mrf.mxu1 }
 0x2a6   : > { %v2327_v19 = vadd.f32 %v2300_v12, %v2198_v23  ;;  %v2202_v45 = vadd.f32 %v2181_v55, %v2073_v30 }
 0x2a8   : > { %v2343_v13 = vadd.f32 %v3632_v31, %v2327_v19 }
 0x2a9   : > { %v1942_v48 = vpop.f32.mrf.mxu2 }
 0x2aa   : > { %v2359_v2 = vmax.f32 %v2343_v13, 0.0  ;;  %v1943_v25 = vadd.f32 %v1942_v48, %v3803_v37  ;;  %v2057_v37 = vpop.f32.mrf.mxu3 }
 0x2ac   : > { %2375 = vst [vmem:[%s3652_s8 + $0xc8] sm:$0xff] %v2359_v2  ;;  %v2074_v46 = vadd.f32 %v2055_v59, %v1943_v25 }
 0x2ad   : > { %v2303_v50 = vpop.f32.mrf.mxu1 }
 0x2ae   : > { %v2328_v58 = vadd.f32 %v2303_v50, %v2199_v36  ;;  %v2203_v62 = vadd.f32 %v2184_v27, %v2074_v46 }
 0x2b0   : > { %v2344_v60 = vadd.f32 %v3632_v31, %v2328_v58 }
 0x2b1   : > { %v1944_v17 = vpop.f32.mrf.mxu2 }
 0x2b2   : > { %v2360_v35 = vmax.f32 %v2344_v60, 0.0  ;;  %v1945_v26 = vadd.f32 %v1944_v17, %v3807_v40 }
 0x2b4   : > { %2376 = vst [vmem:[%s3652_s8 + $0xd0] sm:$0xff] %v2360_v35  ;;  %v2075_v56 = vadd.f32 %v2057_v37, %v1945_v26 }
 0x2b5   : > { %v2305_v41 = vpop.f32.mrf.mxu1 }
 0x2b6   : > { %v2329_v44 = vadd.f32 %v2305_v41, %v2200_v53  ;;  %v2204_v63 = vadd.f32 %v2186_v1, %v2075_v56 }
 0x2b8   : > { %v2345_v18 = vadd.f32 %v3632_v31, %v2329_v44 }
 0x2ba   : > { %v2361_v51 = vmax.f32 %v2345_v18, 0.0 }
 0x2bc   : > { %2377 = vst [vmem:[%s3652_s8 + $0xd8] sm:$0xff] %v2361_v51 }
 0x2bd   : > { %v2308_v47 = vpop.f32.mrf.mxu1 }
 0x2be   : > { %v2330_v4 = vadd.f32 %v2308_v47, %v2201_v52 }
 0x2c0   : > { %v2346_v24 = vadd.f32 %v3632_v31, %v2330_v4 }
 0x2c2   : > { %v2362_v54 = vmax.f32 %v2346_v24, 0.0 }
 0x2c4   : > { %2378 = vst [vmem:[%s3652_s8 + $0xe0] sm:$0xff] %v2362_v54 }
 0x2c5   : > { %v2310_v61 = vpop.f32.mrf.mxu1 }
 0x2c6   : > { %v2331_v57 = vadd.f32 %v2310_v61, %v2202_v45 }
 0x2c8   : > { %v2347_v0 = vadd.f32 %v3632_v31, %v2331_v57 }
 0x2ca   : > { %v2363_v42 = vmax.f32 %v2347_v0, 0.0 }
 0x2cc   : > { %2379 = vst [vmem:[%s3652_s8 + $0xe8] sm:$0xff] %v2363_v42 }
 0x2cd   : > { %v2313_v38 = vpop.f32.mrf.mxu1 }
 0x2ce   : > { %v2332_v5 = vadd.f32 %v2313_v38, %v2203_v62 }
 0x2d0   : > { %v2348_v10 = vadd.f32 %v3632_v31, %v2332_v5 }
 0x2d2   : > { %v2364_v33 = vmax.f32 %v2348_v10, 0.0 }
 0x2d4   : > { %2380 = vst [vmem:[%s3652_s8 + $0xf0] sm:$0xff] %v2364_v33 }
 0x2d5   : > { %v2315_v40 = vpop.f32.mrf.mxu1 }
 0x2d6   : > { %v2333_v15 = vadd.f32 %v2315_v40, %v2204_v63 }
 0x2d8   : > { %v2349_v39 = vadd.f32 %v3632_v31, %v2333_v15 }
 0x2da   : > { %v2365_v9 = vmax.f32 %v2349_v39, 0.0 }
 0x2dc   : > { %2381 = vst [vmem:[%s3652_s8 + $0xf8] sm:$0xff] %v2365_v9 }
 0x2dd   : > { %2705 = shalt.err (!%p2702_p3)
}
 0x2de   : > { %s2747_s4 = smov 128  }
 0x2df   : > { %2632 = dma.vmem_to_hbm [thread:$0]  (%p2806_p5), %s2396_s17, 4096, %s2398_s19, %s2383_s16, %s2747_s4, %s2747_s4, %s2742_s29  }
 0x2e0 PF: > { %p2638_p4 = scmp.ge.s32.totalorder %s2740_s15, 2  ;;  %s2412_s6 = sand.u32 1, %s2728_s12  }
 0x2e1   : > { %s2413_s7 = scalar_lea.sflag [#allocation4], %s2412_s6 }
 0x2e2   : > { %p2635_p7 = pnand %p2638_p4, %p2810_p6 }
 0x2e4   : > { %p2636_p8 = pneg %p2635_p7 }
 0x2e6   : > { %2723 = dma.done.wait (%p2636_p8), %s2413_s7, 4096  }
 0x2e7   : > { %2725 = vsyncadd (%p2636_p8), %s2413_s7, 4294963200  ;;  %p13_p9 = scmp.ge.s32.totalorder %s2793_s18, 4   ;;  %s3897_s12 = smov %s2732_s13 }
 0x2e8   : > { %s3898_s13 = smov %s2736_s14  ;;  %s3899_s14 = smov %s2804_s21 }
 0x2e9   : > { %s3900_s15 = smov %s2793_s18  ;;  %15 = sbr.rel (!%p13_p9) target bundleno = 3 (0x3), region = 80 }
 0x2ee   :  { %2419 = vsyncpa [#allocation4], 1 }
 0x2ef   :  { %2421 = vsyncpa [#allocation4 + $0x1], 1 }

</bundles_post_ra>
